<compile_context>
chip_gen: v7x
topology: tpu7x:2x2x1
jax: 0.10.0
libtpu: 0.0.40
codegen_flags: <defaults>
</compile_context>

<pallas_src>
import functools

import jax
import jax.numpy as jnp
from jax import lax
from jax.experimental import pallas as pl
from jax.experimental.pallas import tpu as pltpu


LANE = 128


def _round_up(x, m):
    return ((x + m - 1) // m) * m


def _pad_last(x, target, value):
    pad = target - x.shape[-1]
    if pad <= 0:
        return x
    cfg = [(0, 0)] * (x.ndim - 1) + [(0, pad)]
    return jnp.pad(x, cfg, constant_values=value)


# --------------------------- kernel 1: detect head --------------------------

def _detect_kernel(coords_ref, cls_ref, cnt_ref, reg_ref,
                   scores_ref, classes_ref, boxes_ref):
    # Channel-major, lane-dense blocks (one N-tile, all batches):
    #   cls [B, C, T]   cnt [B, 1, T]   reg [B, 4, T]   coords [2, T]
    cls = cls_ref[...].astype(jnp.float32)                      # [B, C, T]
    b, c_num, t = cls.shape

    # torch.max(dim=-1) on sigmoid(cls): sigmoid is strictly monotonic, so
    # max/argmax of the raw logits is identical; strict '>' update reproduces
    # torch's first-index tie-breaking.  Pure VPU, no cross-lane reduction.
    max_logit = cls[:, 0, :]
    arg = jnp.zeros((b, t), jnp.int32)
    for c in range(1, c_num):
        v = cls[:, c, :]
        better = v > max_logit
        max_logit = jnp.where(better, v, max_logit)
        arg = jnp.where(better, c, arg)

    cls_score = jax.nn.sigmoid(max_logit)                        # [B, T]
    cnt_score = jax.nn.sigmoid(cnt_ref[...][:, 0, :].astype(jnp.float32))
    scores_ref[:, 0, :] = jnp.sqrt(cls_score * cnt_score)        # add_centerness
    classes_ref[:, 0, :] = arg + 1

    # _coords2boxes: [x - l, y - t, x + r, y + b] as four lane-dense row stores.
    reg = reg_ref[...].astype(jnp.float32)                       # [B, 4, T]
    x = coords_ref[0:1, :]                                       # [1, T]
    y = coords_ref[1:2, :]
    boxes_ref[:, 0, :] = x - reg[:, 0, :]
    boxes_ref[:, 1, :] = y - reg[:, 1, :]
    boxes_ref[:, 2, :] = x + reg[:, 2, :]
    boxes_ref[:, 3, :] = y + reg[:, 3, :]


def _detect_head_core(coords, cls_logits, cnt_logits, reg_preds, n_tile):
    B, C, npad = cls_logits.shape
    assert npad % n_tile == 0
    grid = (npad // n_tile,)
    out_shapes = (
        jax.ShapeDtypeStruct((B, 1, npad), jnp.float32),
        jax.ShapeDtypeStruct((B, 1, npad), jnp.int32),
        jax.ShapeDtypeStruct((B, 4, npad), jnp.float32),
    )
    return pl.pallas_call(
        _detect_kernel,
        out_shape=out_shapes,
        grid=grid,
        in_specs=[
            pl.BlockSpec((2, n_tile), lambda n: (0, n)),
            pl.BlockSpec((B, C, n_tile), lambda n: (0, 0, n)),
            pl.BlockSpec((B, 1, n_tile), lambda n: (0, 0, n)),
            pl.BlockSpec((B, 4, n_tile), lambda n: (0, 0, n)),
        ],
        out_specs=(
            pl.BlockSpec((B, 1, n_tile), lambda n: (0, 0, n)),
            pl.BlockSpec((B, 1, n_tile), lambda n: (0, 0, n)),
            pl.BlockSpec((B, 4, n_tile), lambda n: (0, 0, n)),
        ),
        compiler_params=pltpu.CompilerParams(
            dimension_semantics=("parallel",)),
    )(coords, cls_logits, cnt_logits, reg_preds)


# ---------------------------- kernel 2: greedy NMS ---------------------------

def _nms_kernel(brow_ref, bcol_ref, valid_ref, keep_ref, sup_scr,
                *, iou_thr, k_real):
    # Per-batch blocks: brow [1,4,Kpad] (x1,y1,x2,y2 rows, class-offset boxes),
    # bcol [1,Kpad,4] (same boxes, box-major), valid [1,1,Kpad] (0/1 f32).
    kpad = brow_ref.shape[2]
    R = 8

    x1r = brow_ref[0, 0:1, :]
    y1r = brow_ref[0, 1:2, :]
    x2r = brow_ref[0, 2:3, :]
    y2r = brow_ref[0, 3:4, :]
    area_r = (x2r - x1r + 1.0) * (y2r - y1r + 1.0)               # [1, kpad]

    col_ids = lax.broadcasted_iota(jnp.int32, (R, kpad), 1)
    sub_ids = lax.broadcasted_iota(jnp.int32, (R, kpad), 0)

    # Build the strictly-upper-triangular suppression matrix (iou > thr, j > i)
    # in 8-row chunks (lane-dense, bounded register pressure) into VMEM scratch.
    for blk in range(kpad // R):
        s = blk * R
        bc = bcol_ref[0, s:s + R, :]                             # [R, 4]
        x1c = bc[:, 0:1]
        y1c = bc[:, 1:2]
        x2c = bc[:, 2:3]
        y2c = bc[:, 3:4]
        area_c = (x2c - x1c + 1.0) * (y2c - y1c + 1.0)           # [R, 1]
        xx1 = jnp.maximum(x1c, x1r)
        yy1 = jnp.maximum(y1c, y1r)
        xx2 = jnp.minimum(x2c, x2r)
        yy2 = jnp.minimum(y2c, y2r)
        inter = jnp.maximum(xx2 - xx1, 0.0) * jnp.maximum(yy2 - yy1, 0.0)
        iou = inter / (area_c + area_r - inter)                  # [R, kpad]
        sup = jnp.where((iou > iou_thr) & (col_ids > sub_ids + s), 1.0, 0.0)
        sup_scr[s:s + R, :] = sup

    # Greedy suppression in score order (rows come pre-sorted from top_k):
    # keep[j] survives iff no kept i<j has iou(i,j) > thr.
    col_vec = lax.broadcasted_iota(jnp.int32, (1, kpad), 1)
    keep0 = valid_ref[0, 0:1, :]                                 # [1, kpad] 0/1

    n_blk = (k_real + R - 1) // R

    def body(blk, keep):
        start = pl.multiple_of(blk * R, R)
        rows = sup_scr[pl.ds(start, R), :]                       # [R, kpad]
        for r in range(R):
            i = blk * R + r
            keep_i = jnp.max(jnp.where(col_vec == i, keep, 0.0))
            keep = keep * (1.0 - rows[r:r + 1, :] * keep_i)
        return keep

    keep_ref[0, 0:1, :] = lax.fori_loop(0, n_blk, body, keep0)


def _batched_nms(boxes4, scores, classes, score_thr, iou_thr):
    """boxes4 [B,4,K] (x1,y1,x2,y2 rows), scores [B,K] sorted desc, classes [B,K].
    Returns keep mask [B,K] (per-class-offset greedy NMS, torch box_nms semantics)."""
    B, _, K = boxes4.shape
    valid = scores >= score_thr                                   # [B, K]
    coord_max = jnp.max(boxes4, axis=1)                           # [B, K]
    max_coord = jnp.max(jnp.where(valid, coord_max, -jnp.inf), axis=-1)
    max_coord = jnp.where(jnp.any(valid, axis=-1), max_coord, 0.0)
    offs = classes.astype(jnp.float32) * (max_coord[:, None] + 1.0)
    b_off = boxes4 + offs[:, None, :]                             # [B, 4, K]

    kpad = _round_up(K, LANE)
    b_rows = _pad_last(b_off, kpad, 0.0)                          # [B, 4, Kpad]
    b_cols = jnp.transpose(b_rows, (0, 2, 1))                     # [B, Kpad, 4]
    valid_f = _pad_last(valid.astype(jnp.float32)[:, None, :], kpad, 0.0)

    kernel = functools.partial(_nms_kernel, iou_thr=float(iou_thr), k_real=K)
    keep_f = pl.pallas_call(
        kernel,
        out_shape=jax.ShapeDtypeStruct((B, 1, kpad), jnp.float32),
        grid=(B,),
        in_specs=[
            pl.BlockSpec((1, 4, kpad), lambda b: (b, 0, 0)),
            pl.BlockSpec((1, kpad, 4), lambda b: (b, 0, 0)),
            pl.BlockSpec((1, 1, kpad), lambda b: (b, 0, 0)),
        ],
        out_specs=pl.BlockSpec((1, 1, kpad), lambda b: (b, 0, 0)),
        scratch_shapes=[pltpu.VMEM((kpad, kpad), jnp.float32)],
        compiler_params=pltpu.CompilerParams(
            dimension_semantics=("parallel",)),
    )(b_rows, b_cols, valid_f)
    return keep_f[:, 0, :K] > 0.5


# --------------------------------- glue -------------------------------------

def _coords_fmap2orig(h, w, stride):
    shifts_x = jnp.arange(0, w * stride, stride, dtype=jnp.float32)
    shifts_y = jnp.arange(0, h * stride, stride, dtype=jnp.float32)
    shift_y, shift_x = jnp.meshgrid(shifts_y, shifts_x, indexing="ij")
    coords = jnp.stack([shift_x.reshape(-1), shift_y.reshape(-1)], axis=0)
    return coords + float(stride // 2)                            # [2, h*w]


def _reshape_cat_out(inputs, strides):
    # NCHW -> channel-major [B, C, sum(h*w)]; no transposes needed.
    B, c = inputs[0].shape[0], inputs[0].shape[1]
    outs, coords = [], []
    for pred, stride in zip(inputs, strides):
        h, w = pred.shape[2], pred.shape[3]
        outs.append(pred.reshape(B, c, h * w))
        coords.append(_coords_fmap2orig(h, w, stride))
    return jnp.concatenate(outs, axis=-1), jnp.concatenate(coords, axis=-1)


def detect_head_forward(cls_list, cnt_list, reg_list, strides,
                        score_threshold=0.05, nms_iou_threshold=0.6,
                        max_detection_boxes_num=1000, n_tile=256):
    cls_cat, coords = _reshape_cat_out(cls_list, strides)         # [B,C,N], [2,N]
    cnt_cat, _ = _reshape_cat_out(cnt_list, strides)              # [B,1,N]
    reg_cat, _ = _reshape_cat_out(reg_list, strides)              # [B,4,N]

    B, C, N = cls_cat.shape
    npad = _round_up(N, n_tile)

    # Pad N to a lane-friendly multiple; padded class logits are very negative
    # so sigmoid->0 and padded positions can never win top-k or drive NMS.
    cls_p = _pad_last(cls_cat, npad, -1e9)
    cnt_p = _pad_last(cnt_cat, npad, 0.0)
    reg_p = _pad_last(reg_cat, npad, 0.0)
    coords_p = _pad_last(coords, npad, 0.0)

    scores_p, classes_p, boxes_p = _detect_head_core(
        coords_p, cls_p, cnt_p, reg_p, n_tile)

    scores = scores_p[:, 0, :N]                                   # [B, N]
    classes = classes_p[:, 0, :N]                                 # [B, N]
    boxes4 = boxes_p[:, :, :N]                                    # [B, 4, N]

    max_num = min(max_detection_boxes_num, N)
    topk_scores, topk_ind = lax.top_k(scores, max_num)
    classes_topk = jnp.take_along_axis(classes, topk_ind, axis=1)
    boxes_topk4 = jnp.take_along_axis(
        boxes4, jnp.broadcast_to(topk_ind[:, None, :], (B, 4, max_num)), axis=2)

    keep = _batched_nms(boxes_topk4, topk_scores, classes_topk,
                        jnp.float32(score_threshold), nms_iou_threshold)

    boxes_topk = jnp.transpose(boxes_topk4, (0, 2, 1))            # [B, K, 4]
    # TODO(synk): the torch module boolean-masks per batch and torch.stack's
    # variable-length results (dynamic shapes); here we return fixed-shape
    # top-k outputs plus the NMS keep mask instead.
    return topk_scores, classes_topk, boxes_topk, keep


# --------------------------------- main --------------------------------------

if __name__ == "__main__":
    key = jax.random.PRNGKey(0)
    B, class_num = 2, 16
    strides = [8, 16, 32, 64, 128]
    sizes = [(16, 16), (8, 8), (4, 4), (2, 2), (1, 1)]   # 5 FPN levels, N = 341

    keys = jax.random.split(key, 3 * len(sizes))
    cls_list, cnt_list, reg_list = [], [], []
    for i, (h, w) in enumerate(sizes):
        k1, k2, k3 = keys[3 * i], keys[3 * i + 1], keys[3 * i + 2]
        cls_list.append(jax.random.normal(k1, (B, class_num, h, w), jnp.float32))
        cnt_list.append(jax.random.normal(k2, (B, 1, h, w), jnp.float32))
        reg_list.append(jax.random.uniform(k3, (B, 4, h, w), jnp.float32,
                                           minval=0.0, maxval=32.0))

    scores, classes, boxes, keep = detect_head_forward(
        cls_list, cnt_list, reg_list, strides)
    jax.block_until_ready((scores, classes, boxes, keep))

    assert scores.shape == (B, 341)
    assert classes.shape == (B, 341)
    assert boxes.shape == (B, 341, 4)
    assert keep.shape == (B, 341)
    print("KERNEL_OK")
</pallas_src>

<mosaic_0001>
module attributes {stable_mosaic.version = 11 : i64} {
  func.func @_detect_kernel(%arg0: i32, %arg1: memref<2x256xf32, #tpu.memory_space<vmem>>, %arg2: memref<2x16x256xf32, #tpu.memory_space<vmem>>, %arg3: memref<2x1x256xf32, #tpu.memory_space<vmem>>, %arg4: memref<2x4x256xf32, #tpu.memory_space<vmem>>, %arg5: memref<2x1x256xf32, #tpu.memory_space<vmem>>, %arg6: memref<2x1x256xi32, #tpu.memory_space<vmem>>, %arg7: memref<2x4x256xf32, #tpu.memory_space<vmem>>) attributes {dimension_semantics = [#tpu.dimension_semantics<parallel>], iteration_bounds = array<i64: 2>, scalar_prefetch = 0 : i64, scratch_operands = 0 : i64, tpu.core_type = #tpu.core_type<tc>, window_params = [{transform_indices = @transform_0, window_bounds = array<i64: 2, 256>}, {transform_indices = @transform_1, window_bounds = array<i64: 2, 16, 256>}, {transform_indices = @transform_2, window_bounds = array<i64: 2, 1, 256>}, {transform_indices = @transform_3, window_bounds = array<i64: 2, 4, 256>}, {transform_indices = @transform_4, window_bounds = array<i64: 2, 1, 256>}, {transform_indices = @transform_5, window_bounds = array<i64: 2, 1, 256>}, {transform_indices = @transform_6, window_bounds = array<i64: 2, 4, 256>}]} {
    %c0 = arith.constant 0 : index
    %c0_0 = arith.constant 0 : index
    %c0_1 = arith.constant 0 : index
    %0 = vector.load %arg2[%c0, %c0_0, %c0_1] : memref<2x16x256xf32, #tpu.memory_space<vmem>>, vector<2x16x256xf32>
    %1 = vector.extract_strided_slice %0 {offsets = [0, 0, 0], sizes = [2, 1, 256], strides = [1, 1, 1]} : vector<2x16x256xf32> to vector<2x1x256xf32>
    %2 = vector.shape_cast %1 : vector<2x1x256xf32> to vector<2x256xf32>
    %c0_i32 = arith.constant 0 : i32
    %3 = vector.broadcast %c0_i32 : i32 to vector<2x256xi32>
    %4 = vector.extract_strided_slice %0 {offsets = [0, 1, 0], sizes = [2, 1, 256], strides = [1, 1, 1]} : vector<2x16x256xf32> to vector<2x1x256xf32>
    %5 = vector.shape_cast %4 : vector<2x1x256xf32> to vector<2x256xf32>
    %6 = arith.cmpf ogt, %5, %2 : vector<2x256xf32>
    %7 = arith.select %6, %5, %2 : vector<2x256xi1>, vector<2x256xf32>
    %c1_i32 = arith.constant 1 : i32
    %8 = vector.broadcast %c1_i32 : i32 to vector<2x256xi32>
    %9 = arith.select %6, %8, %3 : vector<2x256xi1>, vector<2x256xi32>
    %10 = vector.extract_strided_slice %0 {offsets = [0, 2, 0], sizes = [2, 1, 256], strides = [1, 1, 1]} : vector<2x16x256xf32> to vector<2x1x256xf32>
    %11 = vector.shape_cast %10 : vector<2x1x256xf32> to vector<2x256xf32>
    %12 = arith.cmpf ogt, %11, %7 : vector<2x256xf32>
    %13 = arith.select %12, %11, %7 : vector<2x256xi1>, vector<2x256xf32>
    %c2_i32 = arith.constant 2 : i32
    %14 = vector.broadcast %c2_i32 : i32 to vector<2x256xi32>
    %15 = arith.select %12, %14, %9 : vector<2x256xi1>, vector<2x256xi32>
    %16 = vector.extract_strided_slice %0 {offsets = [0, 3, 0], sizes = [2, 1, 256], strides = [1, 1, 1]} : vector<2x16x256xf32> to vector<2x1x256xf32>
    %17 = vector.shape_cast %16 : vector<2x1x256xf32> to vector<2x256xf32>
    %18 = arith.cmpf ogt, %17, %13 : vector<2x256xf32>
    %19 = arith.select %18, %17, %13 : vector<2x256xi1>, vector<2x256xf32>
    %c3_i32 = arith.constant 3 : i32
    %20 = vector.broadcast %c3_i32 : i32 to vector<2x256xi32>
    %21 = arith.select %18, %20, %15 : vector<2x256xi1>, vector<2x256xi32>
    %22 = vector.extract_strided_slice %0 {offsets = [0, 4, 0], sizes = [2, 1, 256], strides = [1, 1, 1]} : vector<2x16x256xf32> to vector<2x1x256xf32>
    %23 = vector.shape_cast %22 : vector<2x1x256xf32> to vector<2x256xf32>
    %24 = arith.cmpf ogt, %23, %19 : vector<2x256xf32>
    %25 = arith.select %24, %23, %19 : vector<2x256xi1>, vector<2x256xf32>
    %c4_i32 = arith.constant 4 : i32
    %26 = vector.broadcast %c4_i32 : i32 to vector<2x256xi32>
    %27 = arith.select %24, %26, %21 : vector<2x256xi1>, vector<2x256xi32>
    %28 = vector.extract_strided_slice %0 {offsets = [0, 5, 0], sizes = [2, 1, 256], strides = [1, 1, 1]} : vector<2x16x256xf32> to vector<2x1x256xf32>
    %29 = vector.shape_cast %28 : vector<2x1x256xf32> to vector<2x256xf32>
    %30 = arith.cmpf ogt, %29, %25 : vector<2x256xf32>
    %31 = arith.select %30, %29, %25 : vector<2x256xi1>, vector<2x256xf32>
    %c5_i32 = arith.constant 5 : i32
    %32 = vector.broadcast %c5_i32 : i32 to vector<2x256xi32>
    %33 = arith.select %30, %32, %27 : vector<2x256xi1>, vector<2x256xi32>
    %34 = vector.extract_strided_slice %0 {offsets = [0, 6, 0], sizes = [2, 1, 256], strides = [1, 1, 1]} : vector<2x16x256xf32> to vector<2x1x256xf32>
    %35 = vector.shape_cast %34 : vector<2x1x256xf32> to vector<2x256xf32>
    %36 = arith.cmpf ogt, %35, %31 : vector<2x256xf32>
    %37 = arith.select %36, %35, %31 : vector<2x256xi1>, vector<2x256xf32>
    %c6_i32 = arith.constant 6 : i32
    %38 = vector.broadcast %c6_i32 : i32 to vector<2x256xi32>
    %39 = arith.select %36, %38, %33 : vector<2x256xi1>, vector<2x256xi32>
    %40 = vector.extract_strided_slice %0 {offsets = [0, 7, 0], sizes = [2, 1, 256], strides = [1, 1, 1]} : vector<2x16x256xf32> to vector<2x1x256xf32>
    %41 = vector.shape_cast %40 : vector<2x1x256xf32> to vector<2x256xf32>
    %42 = arith.cmpf ogt, %41, %37 : vector<2x256xf32>
    %43 = arith.select %42, %41, %37 : vector<2x256xi1>, vector<2x256xf32>
    %c7_i32 = arith.constant 7 : i32
    %44 = vector.broadcast %c7_i32 : i32 to vector<2x256xi32>
    %45 = arith.select %42, %44, %39 : vector<2x256xi1>, vector<2x256xi32>
    %46 = vector.extract_strided_slice %0 {offsets = [0, 8, 0], sizes = [2, 1, 256], strides = [1, 1, 1]} : vector<2x16x256xf32> to vector<2x1x256xf32>
    %47 = vector.shape_cast %46 : vector<2x1x256xf32> to vector<2x256xf32>
    %48 = arith.cmpf ogt, %47, %43 : vector<2x256xf32>
    %49 = arith.select %48, %47, %43 : vector<2x256xi1>, vector<2x256xf32>
    %c8_i32 = arith.constant 8 : i32
    %50 = vector.broadcast %c8_i32 : i32 to vector<2x256xi32>
    %51 = arith.select %48, %50, %45 : vector<2x256xi1>, vector<2x256xi32>
    %52 = vector.extract_strided_slice %0 {offsets = [0, 9, 0], sizes = [2, 1, 256], strides = [1, 1, 1]} : vector<2x16x256xf32> to vector<2x1x256xf32>
    %53 = vector.shape_cast %52 : vector<2x1x256xf32> to vector<2x256xf32>
    %54 = arith.cmpf ogt, %53, %49 : vector<2x256xf32>
    %55 = arith.select %54, %53, %49 : vector<2x256xi1>, vector<2x256xf32>
    %c9_i32 = arith.constant 9 : i32
    %56 = vector.broadcast %c9_i32 : i32 to vector<2x256xi32>
    %57 = arith.select %54, %56, %51 : vector<2x256xi1>, vector<2x256xi32>
    %58 = vector.extract_strided_slice %0 {offsets = [0, 10, 0], sizes = [2, 1, 256], strides = [1, 1, 1]} : vector<2x16x256xf32> to vector<2x1x256xf32>
    %59 = vector.shape_cast %58 : vector<2x1x256xf32> to vector<2x256xf32>
    %60 = arith.cmpf ogt, %59, %55 : vector<2x256xf32>
    %61 = arith.select %60, %59, %55 : vector<2x256xi1>, vector<2x256xf32>
    %c10_i32 = arith.constant 10 : i32
    %62 = vector.broadcast %c10_i32 : i32 to vector<2x256xi32>
    %63 = arith.select %60, %62, %57 : vector<2x256xi1>, vector<2x256xi32>
    %64 = vector.extract_strided_slice %0 {offsets = [0, 11, 0], sizes = [2, 1, 256], strides = [1, 1, 1]} : vector<2x16x256xf32> to vector<2x1x256xf32>
    %65 = vector.shape_cast %64 : vector<2x1x256xf32> to vector<2x256xf32>
    %66 = arith.cmpf ogt, %65, %61 : vector<2x256xf32>
    %67 = arith.select %66, %65, %61 : vector<2x256xi1>, vector<2x256xf32>
    %c11_i32 = arith.constant 11 : i32
    %68 = vector.broadcast %c11_i32 : i32 to vector<2x256xi32>
    %69 = arith.select %66, %68, %63 : vector<2x256xi1>, vector<2x256xi32>
    %70 = vector.extract_strided_slice %0 {offsets = [0, 12, 0], sizes = [2, 1, 256], strides = [1, 1, 1]} : vector<2x16x256xf32> to vector<2x1x256xf32>
    %71 = vector.shape_cast %70 : vector<2x1x256xf32> to vector<2x256xf32>
    %72 = arith.cmpf ogt, %71, %67 : vector<2x256xf32>
    %73 = arith.select %72, %71, %67 : vector<2x256xi1>, vector<2x256xf32>
    %c12_i32 = arith.constant 12 : i32
    %74 = vector.broadcast %c12_i32 : i32 to vector<2x256xi32>
    %75 = arith.select %72, %74, %69 : vector<2x256xi1>, vector<2x256xi32>
    %76 = vector.extract_strided_slice %0 {offsets = [0, 13, 0], sizes = [2, 1, 256], strides = [1, 1, 1]} : vector<2x16x256xf32> to vector<2x1x256xf32>
    %77 = vector.shape_cast %76 : vector<2x1x256xf32> to vector<2x256xf32>
    %78 = arith.cmpf ogt, %77, %73 : vector<2x256xf32>
    %79 = arith.select %78, %77, %73 : vector<2x256xi1>, vector<2x256xf32>
    %c13_i32 = arith.constant 13 : i32
    %80 = vector.broadcast %c13_i32 : i32 to vector<2x256xi32>
    %81 = arith.select %78, %80, %75 : vector<2x256xi1>, vector<2x256xi32>
    %82 = vector.extract_strided_slice %0 {offsets = [0, 14, 0], sizes = [2, 1, 256], strides = [1, 1, 1]} : vector<2x16x256xf32> to vector<2x1x256xf32>
    %83 = vector.shape_cast %82 : vector<2x1x256xf32> to vector<2x256xf32>
    %84 = arith.cmpf ogt, %83, %79 : vector<2x256xf32>
    %85 = arith.select %84, %83, %79 : vector<2x256xi1>, vector<2x256xf32>
    %c14_i32 = arith.constant 14 : i32
    %86 = vector.broadcast %c14_i32 : i32 to vector<2x256xi32>
    %87 = arith.select %84, %86, %81 : vector<2x256xi1>, vector<2x256xi32>
    %88 = vector.extract_strided_slice %0 {offsets = [0, 15, 0], sizes = [2, 1, 256], strides = [1, 1, 1]} : vector<2x16x256xf32> to vector<2x1x256xf32>
    %89 = vector.shape_cast %88 : vector<2x1x256xf32> to vector<2x256xf32>
    %90 = arith.cmpf ogt, %89, %85 : vector<2x256xf32>
    %91 = arith.select %90, %89, %85 : vector<2x256xi1>, vector<2x256xf32>
    %c15_i32 = arith.constant 15 : i32
    %92 = vector.broadcast %c15_i32 : i32 to vector<2x256xi32>
    %93 = arith.select %90, %92, %87 : vector<2x256xi1>, vector<2x256xi32>
    %94 = arith.negf %91 : vector<2x256xf32>
    %95 = math.exp %94 : vector<2x256xf32>
    %cst = arith.constant 1.000000e+00 : f32
    %96 = vector.broadcast %cst : f32 to vector<2x256xf32>
    %97 = arith.addf %96, %95 : vector<2x256xf32>
    %98 = arith.divf %96, %97 : vector<2x256xf32>
    %c0_2 = arith.constant 0 : index
    %c0_3 = arith.constant 0 : index
    %c0_4 = arith.constant 0 : index
    %99 = vector.load %arg3[%c0_2, %c0_3, %c0_4] : memref<2x1x256xf32, #tpu.memory_space<vmem>>, vector<2x1x256xf32>
    %100 = vector.shape_cast %99 : vector<2x1x256xf32> to vector<2x256xf32>
    %101 = arith.negf %100 : vector<2x256xf32>
    %102 = math.exp %101 : vector<2x256xf32>
    %cst_5 = arith.constant 1.000000e+00 : f32
    %103 = vector.broadcast %cst_5 : f32 to vector<2x256xf32>
    %104 = arith.addf %103, %102 : vector<2x256xf32>
    %105 = arith.divf %103, %104 : vector<2x256xf32>
    %106 = arith.mulf %98, %105 : vector<2x256xf32>
    %107 = math.sqrt %106 : vector<2x256xf32>
    %c0_6 = arith.constant 0 : index
    %c0_7 = arith.constant 0 : index
    %c0_8 = arith.constant 0 : index
    %108 = vector.load %arg5[%c0_6, %c0_7, %c0_8] : memref<2x1x256xf32, #tpu.memory_space<vmem>>, vector<2x1x256xf32>
    %109 = vector.shape_cast %108 : vector<2x1x256xf32> to vector<2x256xf32>
    %110 = vector.shape_cast %107 : vector<2x256xf32> to vector<2x1x256xf32>
    tpu.vector_store %arg5[%c0_6, %c0_7, %c0_8], %110 {strides = array<i32>} : memref<2x1x256xf32, #tpu.memory_space<vmem>>, vector<2x1x256xf32>,
    %c1_i32_9 = arith.constant 1 : i32
    %111 = vector.broadcast %c1_i32_9 : i32 to vector<2x256xi32>
    %112 = arith.addi %93, %111 : vector<2x256xi32>
    %c0_10 = arith.constant 0 : index
    %c0_11 = arith.constant 0 : index
    %c0_12 = arith.constant 0 : index
    %113 = vector.load %arg6[%c0_10, %c0_11, %c0_12] : memref<2x1x256xi32, #tpu.memory_space<vmem>>, vector<2x1x256xi32>
    %114 = vector.shape_cast %113 : vector<2x1x256xi32> to vector<2x256xi32>
    %115 = vector.shape_cast %112 : vector<2x256xi32> to vector<2x1x256xi32>
    tpu.vector_store %arg6[%c0_10, %c0_11, %c0_12], %115 {strides = array<i32>} : memref<2x1x256xi32, #tpu.memory_space<vmem>>, vector<2x1x256xi32>,
    %c0_13 = arith.constant 0 : index
    %c0_14 = arith.constant 0 : index
    %c0_15 = arith.constant 0 : index
    %116 = vector.load %arg4[%c0_13, %c0_14, %c0_15] : memref<2x4x256xf32, #tpu.memory_space<vmem>>, vector<2x4x256xf32>
    %c0_16 = arith.constant 0 : index
    %c0_17 = arith.constant 0 : index
    %117 = vector.load %arg1[%c0_16, %c0_17] : memref<2x256xf32, #tpu.memory_space<vmem>>, vector<1x256xf32>
    %c1 = arith.constant 1 : index
    %c0_18 = arith.constant 0 : index
    %118 = vector.load %arg1[%c1, %c0_18] : memref<2x256xf32, #tpu.memory_space<vmem>>, vector<1x256xf32>
    %119 = vector.extract_strided_slice %116 {offsets = [0, 0, 0], sizes = [2, 1, 256], strides = [1, 1, 1]} : vector<2x4x256xf32> to vector<2x1x256xf32>
    %120 = vector.shape_cast %119 : vector<2x1x256xf32> to vector<2x256xf32>
    %121 = vector.broadcast %117 : vector<1x256xf32> to vector<2x256xf32>
    %122 = arith.subf %121, %120 : vector<2x256xf32>
    %c0_19 = arith.constant 0 : index
    %c0_20 = arith.constant 0 : index
    %c0_21 = arith.constant 0 : index
    %123 = vector.load %arg7[%c0_19, %c0_20, %c0_21] : memref<2x4x256xf32, #tpu.memory_space<vmem>>, vector<2x1x256xf32>
    %124 = vector.shape_cast %123 : vector<2x1x256xf32> to vector<2x256xf32>
    %125 = vector.shape_cast %122 : vector<2x256xf32> to vector<2x1x256xf32>
    tpu.vector_store %arg7[%c0_19, %c0_20, %c0_21], %125 {strides = array<i32>} : memref<2x4x256xf32, #tpu.memory_space<vmem>>, vector<2x1x256xf32>,
    %126 = vector.extract_strided_slice %116 {offsets = [0, 1, 0], sizes = [2, 1, 256], strides = [1, 1, 1]} : vector<2x4x256xf32> to vector<2x1x256xf32>
    %127 = vector.shape_cast %126 : vector<2x1x256xf32> to vector<2x256xf32>
    %128 = vector.broadcast %118 : vector<1x256xf32> to vector<2x256xf32>
    %129 = arith.subf %128, %127 : vector<2x256xf32>
    %c0_22 = arith.constant 0 : index
    %c1_23 = arith.constant 1 : index
    %c0_24 = arith.constant 0 : index
    %130 = vector.load %arg7[%c0_22, %c1_23, %c0_24] : memref<2x4x256xf32, #tpu.memory_space<vmem>>, vector<2x1x256xf32>
    %131 = vector.shape_cast %130 : vector<2x1x256xf32> to vector<2x256xf32>
    %132 = vector.shape_cast %129 : vector<2x256xf32> to vector<2x1x256xf32>
    tpu.vector_store %arg7[%c0_22, %c1_23, %c0_24], %132 {strides = array<i32>} : memref<2x4x256xf32, #tpu.memory_space<vmem>>, vector<2x1x256xf32>,
    %133 = vector.extract_strided_slice %116 {offsets = [0, 2, 0], sizes = [2, 1, 256], strides = [1, 1, 1]} : vector<2x4x256xf32> to vector<2x1x256xf32>
    %134 = vector.shape_cast %133 : vector<2x1x256xf32> to vector<2x256xf32>
    %135 = vector.broadcast %117 : vector<1x256xf32> to vector<2x256xf32>
    %136 = arith.addf %135, %134 : vector<2x256xf32>
    %c0_25 = arith.constant 0 : index
    %c2 = arith.constant 2 : index
    %c0_26 = arith.constant 0 : index
    %137 = vector.load %arg7[%c0_25, %c2, %c0_26] : memref<2x4x256xf32, #tpu.memory_space<vmem>>, vector<2x1x256xf32>
    %138 = vector.shape_cast %137 : vector<2x1x256xf32> to vector<2x256xf32>
    %139 = vector.shape_cast %136 : vector<2x256xf32> to vector<2x1x256xf32>
    tpu.vector_store %arg7[%c0_25, %c2, %c0_26], %139 {strides = array<i32>} : memref<2x4x256xf32, #tpu.memory_space<vmem>>, vector<2x1x256xf32>,
    %140 = vector.extract_strided_slice %116 {offsets = [0, 3, 0], sizes = [2, 1, 256], strides = [1, 1, 1]} : vector<2x4x256xf32> to vector<2x1x256xf32>
    %141 = vector.shape_cast %140 : vector<2x1x256xf32> to vector<2x256xf32>
    %142 = vector.broadcast %118 : vector<1x256xf32> to vector<2x256xf32>
    %143 = arith.addf %142, %141 : vector<2x256xf32>
    %c0_27 = arith.constant 0 : index
    %c3 = arith.constant 3 : index
    %c0_28 = arith.constant 0 : index
    %144 = vector.load %arg7[%c0_27, %c3, %c0_28] : memref<2x4x256xf32, #tpu.memory_space<vmem>>, vector<2x1x256xf32>
    %145 = vector.shape_cast %144 : vector<2x1x256xf32> to vector<2x256xf32>
    %146 = vector.shape_cast %143 : vector<2x256xf32> to vector<2x1x256xf32>
    tpu.vector_store %arg7[%c0_27, %c3, %c0_28], %146 {strides = array<i32>} : memref<2x4x256xf32, #tpu.memory_space<vmem>>, vector<2x1x256xf32>,
    return
  }
  func.func @transform_0(%arg0: i32) -> (i32, i32) {
    %c0_i32 = arith.constant 0 : i32
    %c0_i32_0 = arith.constant 0 : i32
    return %c0_i32, %arg0 : i32, i32
  }
  func.func @transform_1(%arg0: i32) -> (i32, i32, i32) {
    %c0_i32 = arith.constant 0 : i32
    %c0_i32_0 = arith.constant 0 : i32
    %c0_i32_1 = arith.constant 0 : i32
    return %c0_i32, %c0_i32_0, %arg0 : i32, i32, i32
  }
  func.func @transform_2(%arg0: i32) -> (i32, i32, i32) {
    %c0_i32 = arith.constant 0 : i32
    %c0_i32_0 = arith.constant 0 : i32
    %c0_i32_1 = arith.constant 0 : i32
    return %c0_i32, %c0_i32_0, %arg0 : i32, i32, i32
  }
  func.func @transform_3(%arg0: i32) -> (i32, i32, i32) {
    %c0_i32 = arith.constant 0 : i32
    %c0_i32_0 = arith.constant 0 : i32
    %c0_i32_1 = arith.constant 0 : i32
    return %c0_i32, %c0_i32_0, %arg0 : i32, i32, i32
  }
  func.func @transform_4(%arg0: i32) -> (i32, i32, i32) {
    %c0_i32 = arith.constant 0 : i32
    %c0_i32_0 = arith.constant 0 : i32
    %c0_i32_1 = arith.constant 0 : i32
    return %c0_i32, %c0_i32_0, %arg0 : i32, i32, i32
  }
  func.func @transform_5(%arg0: i32) -> (i32, i32, i32) {
    %c0_i32 = arith.constant 0 : i32
    %c0_i32_0 = arith.constant 0 : i32
    %c0_i32_1 = arith.constant 0 : i32
    return %c0_i32, %c0_i32_0, %arg0 : i32, i32, i32
  }
  func.func @transform_6(%arg0: i32) -> (i32, i32, i32) {
    %c0_i32 = arith.constant 0 : i32
    %c0_i32_0 = arith.constant 0 : i32
    %c0_i32_1 = arith.constant 0 : i32
    return %c0_i32, %c0_i32_0, %arg0 : i32, i32, i32
  }
}

</mosaic_0001>

<bundles_post_ra>
// kernel: tpu_custom_call.1
= control target key start
LH: loop header
LB: loop body
LE: loop exit
PB: predicated region body
PF: predicated region fallthrough
CT: control target
= control target key end

     0   :  { %s2827_s0 = inlined_call_operand.hbm [shape: f32[2,512], index: 0, kind: input, shape index: {}]   ;;  %s2828_s1 = inlined_call_operand.hbm [shape: f32[2,16,512], index: 1, kind: input, shape index: {}]   ;;  %s2829_s2 = inlined_call_operand.hbm [shape: f32[2,1,512], index: 2, kind: input, shape index: {}]   ;;  %s2830_s3 = inlined_call_operand.hbm [shape: f32[2,4,512], index: 3, kind: input, shape index: {}]   ;;  %s2831_s4 = inlined_call_operand.hbm [shape: f32[2,1,512], index: 4, kind: output, shape index: {0}]   ;;  %s2832_s5 = inlined_call_operand.hbm [shape: s32[2,1,512], index: 5, kind: output, shape index: {1}]   ;;  %s2833_s6 = inlined_call_operand.hbm [shape: f32[2,4,512], index: 6, kind: output, shape index: {2}]  }
   0x1   :  { %2842 = sst [smem:[#allocation21_spill]] %s2827_s0 }
   0x2   :  { %2843 = sst [smem:[#allocation22_spill]] %s2828_s1 }
   0x3   :  { %2844 = sst [smem:[#allocation23_spill]] %s2829_s2 }
   0x4   :  { %12 = vsyncpa [#allocation3], 0 }
   0x5   :  { %14 = vsyncpa [#allocation3 + $0x1], 0 }
   0x6   :  { %15 = vsyncpa [#allocation6], 0 }
   0x7   :  { %17 = vsyncpa [#allocation6 + $0x1], 0 }
   0x8   :  { %18 = vsyncpa [#allocation9], 0 }
   0x9   :  { %20 = vsyncpa [#allocation9 + $0x1], 0 }
   0xa   :  { %21 = vsyncpa [#allocation4], 0 }
   0xb   :  { %23 = vsyncpa [#allocation4 + $0x1], 0 }
   0xc   :  { %24 = vsyncpa [#allocation12], 0 }
   0xd   :  { %26 = vsyncpa [#allocation12 + $0x1], 0  ;;  %s1997_s21 = smov 0   ;;  %s1999_s22 = smov 0  }
   0xe   :  { %s2001_s23 = smov 0   ;;  %s2003_s24 = smov 0  }
   0xf LB: > { %2845 = sst [smem:[#allocation19_spill]] %s1933_s23  ;;  %s2018_s25 = sadd.s32 4294967295, %s1937_s24   ;;  %s1937_s24 = sphi %s2003_s24, %s2899_s24   ;;  %s1933_s23 = sphi %s2001_s23, %s2896_s23   ;;  %s1929_s22 = sphi %s1999_s22, %s2898_s22   ;;  %s1925_s21 = sphi %s1997_s21, %s2897_s21  }
  0x10   : > { %s2836_s26 = sadd.s32 4294967294, %s1937_s24   ;;  %s2022_s27 = sadd.s32 1, %s1937_s24  }
  0x11   : > { %s39_s28 = sadd.s32 1, %s1933_s23  ;;  %s36_s29 = ssub.s32 %s1937_s24, %s2022_s27 }
  0x12   : > { %p46_p0 = scmp.ne.s32.totalorder %s1933_s23, %s1929_s22  ;;  %p37_p1 = scmp.eq.s32.totalorder %s36_s29, 0 }
  0x13   : > { %p47_p2 = scmp.eq.s32.totalorder %s1937_s24, 0  ;;  %p52_p3 = scmp.ne.s32.totalorder %s1929_s22, %s1925_s21 }
  0x14   : > { %p53_p4 = scmp.eq.s32.totalorder %s2018_s25, 0  ;;  %p154_p7 = scmp.eq.s32.totalorder %s2018_s25, 1 }
  0x15   : > { %s2034_s30 = scalar_select %p37_p1, %s1933_s23, %s39_s28  }
  0x16   : > { %p48_p5 = por %p47_p2, %p46_p0  ;;  %p2036_p6 = por %p53_p4, %p52_p3 }
  0x17   : > { %2846 = sst [smem:[#allocation20_spill]] %s2034_s30  ;;  %p160_p8 = scmp.eq.s32.totalorder %s2836_s26, 1 }
  0x18   : > { %s2847_s7 = scalar_select %p2036_p6, 1, 0 }
  0x19   : > { %p1601_p10 = scmp.lt.s32.totalorder %s1937_s24, 2  ;;  %p2045_p11 = por %p154_p7, %p46_p0 }
  0x1a   : > { %p2049_p12 = por %p160_p8, %p52_p3  ;;  %s2054_s10 = sand.u32 1, %s1933_s23  }
  0x1b   : > { %s2848_s8 = scalar_select %p2045_p11, 1, 0 }
  0x1c   : > { %s2849_s9 = scalar_select %p2049_p12, 1, 0 }
  0x1d   : > { %p2056_p13 = pnand %p1601_p10, %p48_p5  ;;  %s251_s12 = sand.u32 1, %s1937_s24  }
  0x1e   : > { %s1515_s13 = sshll.u32 %s2054_s10, 6  ;;  %s1558_s14 = sshll.u32 %s1937_s24, 8 }
  0x1f   : > { %s2850_s11 = scalar_select %p2056_p13, 1, 0 }
  0x20   : > { %s2851_s1 = sld [smem:[#allocation22_spill]]  ;;  %s255_s18 = scalar_lea.vmem [#allocation5], %s1515_s13 }
  0x21   : > { %s262_s19 = sshll.u32 %s255_s18, 4  ;;  %s2070_s20 = scalar_lea.sflag [#allocation6], %s251_s12  ;;  %s2068_s19 = int_to_ptr.vmem [resolvable:$true] %s262_s19 }
  0x22   : > { %p2076_p1 = pneg %p2056_p13 }
  0x26   : > { %s2066_s17 = scalar_lea.hbm %s2851_s1, %s1558_s14  ;;  %s1688_s13 = scalar_lea.hbm %s2851_s1, 2048 }
  0x27   : > { %s1683_s28 = scalar_lea.hbm %s2066_s17, 1024  ;;  %p1689_p4 = scmp.lt.u32.totalorder %s2066_s17, %s2851_s1 }
  0x28   : > { %p1684_p0 = scmp.ne.s32.totalorder %s2066_s17, %s1683_s28  ;;  %p1690_p5 = scmp.lt.u32.totalorder %s1688_s13, %s1683_s28 }
  0x29   : > { %p1692_p8 = scmp.lt.u32.totalorder %s1683_s28, %s2066_s17 }
  0x2a   : > { %p1686_p2 = pnand %p2076_p1, %p1684_p0  ;;  %p1691_p7 = por %p1690_p5, %p1689_p4 }
  0x2c   : > { %p1687_p3 = pneg %p1686_p2  ;;  %p1693_p10 = por %p1692_p8, %p1691_p7 }
  0x2e   : > { %p1694_p9 = pnand %p1693_p10, %p1687_p3 }
  0x30   : > { %1697 = shalt.err (!%p1694_p9)
}
  0x31   : > { %s1698_s12 = scalar_lea.vmem %s2068_s19, 1024  ;;  %s1939_s14 = smov [#allocation5]  }
  0x32   : > { %p1699_p0 = scmp.ne.s32.totalorder %s2068_s19, %s1698_s12  ;;  %s1703_s15 = sshll.u32 %s1939_s14, 4  ;;  %s1704_s15 = int_to_ptr.vmem [resolvable:$false] %s1703_s15 }
  0x33   : > { %s1705_s16 = scalar_lea.vmem %s1704_s15, 2048  ;;  %p1706_p11 = scmp.lt.s32.totalorder %s2068_s19, %s1704_s15 }
  0x34   : > { %p1701_p2 = pnand %p1699_p0, %p2076_p1  ;;  %p1707_p6 = scmp.lt.s32.totalorder %s1705_s16, %s1698_s12 }
  0x36   : > { %p1702_p12 = pneg %p1701_p2  ;;  %p1708_p4 = por %p1707_p6, %p1706_p11 }
  0x38   : > { %p1709_p5 = pnand %p1708_p4, %p1702_p12 }
  0x3a   : > { %1712 = shalt.err (!%p1709_p5)
}
  0x3b   : > { %s1940_s28 = smov 512   ;;  %s2838_s13 = smov 256  }
  0x3c   : > { %s1942_s18 = smov 16   ;;  %p1524_p6 = scmp.ge.s32.totalorder %s1937_s24, 1 }
  0x3d   : > { %1584 = dma.hbm_to_vmem [thread:$0]  (!%p2056_p13), %s2066_s17, 1024, %s2068_s19, %s2070_s20, %s1940_s28, %s2838_s13, %s1942_s18  }
  0x3e   : > { %p312_p9 = scmp.lt.s32.totalorder %s1937_s24, 3  ;;  %s2839_s12 = sshll.u32 %s2054_s10, 2 }
  0x3f   : > { %s1557_s15 = sshll.u32 %s1937_s24, 6  ;;  %s236_s16 = scalar_lea.vmem [#allocation2], %s2839_s12 }
  0x40   : > { %p2104_p11 = pnand %p1524_p6, %p312_p9  ;;  %s244_s26 = sshll.u32 %s236_s16, 4  ;;  %s245_s26 = int_to_ptr.vmem [resolvable:$true] %s244_s26 }
  0x41   : > { %s2854_s0 = sld [smem:[#allocation21_spill]]  ;;  %s233_s17 = scalar_lea.sflag [#allocation3], %s2054_s10 }
  0x42   : > { %s2853_s14 = scalar_select %p2104_p11, 1, 0 }
  0x47   : > { %s2114_s23 = scalar_lea.hbm %s2854_s0, %s1557_s15  ;;  %s1718_s16 = scalar_lea.hbm %s2854_s0, 128 }
  0x48   : > { %s1713_s19 = scalar_lea.hbm %s2114_s23, 64  ;;  %p1719_p8 = scmp.lt.u32.totalorder %s2114_s23, %s2854_s0 }
  0x49   : > { %p1714_p12 = scmp.ne.s32.totalorder %s2114_s23, %s1713_s19  ;;  %p1720_p10 = scmp.lt.u32.totalorder %s1718_s16, %s1713_s19 }
  0x4a   : > { %p1722_p2 = scmp.lt.u32.totalorder %s1713_s19, %s2114_s23 }
  0x4b   : > { %p1716_p3 = pnand %p1714_p12, %p2076_p1  ;;  %p1721_p0 = por %p1720_p10, %p1719_p8 }
  0x4d   : > { %p1717_p7 = pneg %p1716_p3  ;;  %p1723_p4 = por %p1722_p2, %p1721_p0 }
  0x4f   : > { %p1724_p5 = pnand %p1723_p4, %p1717_p7 }
  0x51   : > { %1727 = shalt.err (!%p1724_p5)
}
  0x52   : > { %s1728_s1 = scalar_lea.vmem %s245_s26, 64  ;;  %s1943_s30 = smov [#allocation2]  }
  0x53   : > { %p1729_p6 = scmp.ne.s32.totalorder %s245_s26, %s1728_s1  ;;  %s1733_s15 = sshll.u32 %s1943_s30, 4  ;;  %s1734_s15 = int_to_ptr.vmem [resolvable:$false] %s1733_s15 }
  0x54   : > { %s1735_s28 = scalar_lea.vmem %s1734_s15, 128  ;;  %p1736_p3 = scmp.lt.s32.totalorder %s245_s26, %s1734_s15 }
  0x55   : > { %p1731_p9 = pnand %p1729_p6, %p2076_p1  ;;  %p1737_p11 = scmp.lt.s32.totalorder %s1735_s28, %s1728_s1 }
  0x57   : > { %p1732_p12 = pneg %p1731_p9  ;;  %p1738_p13 = por %p1737_p11, %p1736_p3 }
  0x59   : > { %p1739_p8 = pnand %p1738_p13, %p1732_p12 }
  0x5b   : > { %1742 = shalt.err (!%p1739_p8)
}
  0x5c   : > { %p2855_p10 = scmp.ne.s32.totalorder %s2850_s11, 0  ;;  %s1559_s13 = sshll.u32 %s1937_s24, 5 }
  0x5d   : > { %s2856_s12 = sshll.u32 %s2054_s10, 2  ;;  %s2857_s2 = sld [smem:[#allocation23_spill]] }
  0x5e   : > { %1581 = dma.hbm_to_vmem [thread:$0]  (!%p2855_p10), %s2114_s23, 64, %s245_s26, %s233_s17  }
  0x5f   : > { %s276_s19 = scalar_lea.vmem [#allocation7], %s2856_s12 }
  0x60   : > { %s283_s18 = sshll.u32 %s276_s19, 4  ;;  %s2142_s18 = int_to_ptr.vmem [resolvable:$true] %s283_s18 }
  0x63   : > { %s2140_s0 = scalar_lea.hbm %s2857_s2, %s1559_s13  ;;  %s1748_s17 = scalar_lea.hbm %s2857_s2, 128 }
  0x64   : > { %s1743_s1 = scalar_lea.hbm %s2140_s0, 64  ;;  %p1749_p0 = scmp.lt.u32.totalorder %s2140_s0, %s2857_s2 }
  0x65   : > { %p1744_p13 = scmp.ne.s32.totalorder %s2140_s0, %s1743_s1  ;;  %p1750_p2 = scmp.lt.u32.totalorder %s1748_s17, %s1743_s1 }
  0x66   : > { %p1752_p5 = scmp.lt.u32.totalorder %s1743_s1, %s2140_s0 }
  0x67   : > { %p1746_p11 = pnand %p1744_p13, %p2076_p1  ;;  %p1751_p4 = por %p1750_p2, %p1749_p0 }
  0x69   : > { %p1747_p7 = pneg %p1746_p11  ;;  %p1753_p6 = por %p1752_p5, %p1751_p4 }
  0x6b   : > { %p1754_p9 = pnand %p1753_p6, %p1747_p7 }
  0x6d   : > { %1757 = shalt.err (!%p1754_p9)
}
  0x6e   : > { %s1758_s13 = scalar_lea.vmem %s2142_s18, 64  ;;  %s1944_s12 = smov [#allocation7]  }
  0x6f   : > { %p1759_p12 = scmp.ne.s32.totalorder %s2142_s18, %s1758_s13  ;;  %s1763_s19 = sshll.u32 %s1944_s12, 4  ;;  %s1764_s19 = int_to_ptr.vmem [resolvable:$false] %s1763_s19 }
  0x70   : > { %s1765_s16 = scalar_lea.vmem %s1764_s19, 128  ;;  %p1766_p13 = scmp.lt.s32.totalorder %s2142_s18, %s1764_s19 }
  0x71   : > { %p1761_p3 = pnand %p1759_p12, %p2076_p1  ;;  %p1767_p11 = scmp.lt.s32.totalorder %s1765_s16, %s1758_s13 }
  0x73   : > { %p1762_p8 = pneg %p1761_p3  ;;  %p1768_p0 = por %p1767_p11, %p1766_p13 }
  0x75   : > { %p1769_p2 = pnand %p1768_p0, %p1762_p8 }
  0x77   : > { %1772 = shalt.err (!%p1769_p2)
}
  0x78   : > { %s1945_s30 = smov 64   ;;  %s1946_s1 = smov 32  }
  0x79   : > { %s1947_s23 = smov 2   ;;  %s1521_s26 = sshll.u32 %s2054_s10, 4 }
  0x7a   : > { %1587 = dma.hbm_to_vmem [thread:$0]  (!%p2855_p10), %s2140_s0, 64, %s2142_s18, %s2070_s20, %s1945_s30, %s1946_s1, %s1947_s23  }
  0x7b   : > { %s1560_s17 = sshll.u32 %s1937_s24, 7  ;;  %s297_s12 = scalar_lea.vmem [#allocation8], %s1521_s26 }
  0x7c   : > { %s2171_s13 = scalar_lea.hbm %s2830_s3, %s1560_s17  ;;  %s304_s19 = sshll.u32 %s297_s12, 4  ;;  %s2173_s19 = int_to_ptr.vmem [resolvable:$true] %s304_s19 }
  0x7d   : > { %s294_s16 = scalar_lea.sflag [#allocation9], %s2054_s10  ;;  %s1773_s2 = scalar_lea.hbm %s2171_s13, 256 }
  0x7e   : > { %p1774_p7 = scmp.ne.s32.totalorder %s2171_s13, %s1773_s2  ;;  %s1778_s18 = scalar_lea.hbm %s2830_s3, 512 }
  0x7f   : > { %p1779_p6 = scmp.lt.u32.totalorder %s2171_s13, %s2830_s3  ;;  %p1780_p9 = scmp.lt.u32.totalorder %s1778_s18, %s1773_s2 }
  0x80   : > { %p1776_p4 = pnand %p1774_p7, %p2076_p1  ;;  %p1782_p3 = scmp.lt.u32.totalorder %s1773_s2, %s2171_s13 }
  0x81   : > { %p1781_p12 = por %p1780_p9, %p1779_p6 }
  0x82   : > { %p1777_p5 = pneg %p1776_p4 }
  0x83   : > { %p1783_p8 = por %p1782_p3, %p1781_p12 }
  0x85   : > { %p1784_p13 = pnand %p1783_p8, %p1777_p5 }
  0x87   : > { %1787 = shalt.err (!%p1784_p13)
}
  0x88   : > { %s1788_s23 = scalar_lea.vmem %s2173_s19, 256  ;;  %s1948_s26 = smov [#allocation8]  }
  0x89   : > { %p1789_p11 = scmp.ne.s32.totalorder %s2173_s19, %s1788_s23  ;;  %s1793_s17 = sshll.u32 %s1948_s26, 4  ;;  %s1794_s17 = int_to_ptr.vmem [resolvable:$false] %s1793_s17 }
  0x8a   : > { %s1795_s15 = scalar_lea.vmem %s1794_s17, 512  ;;  %p1796_p7 = scmp.lt.s32.totalorder %s2173_s19, %s1794_s17 }
  0x8b   : > { %p1791_p0 = pnand %p1789_p11, %p2076_p1  ;;  %p1797_p4 = scmp.lt.s32.totalorder %s1795_s15, %s1788_s23 }
  0x8d   : > { %p1792_p2 = pneg %p1791_p0  ;;  %p1798_p6 = por %p1797_p4, %p1796_p7 }
  0x8f   : > { %p1799_p9 = pnand %p1798_p6, %p1792_p2 }
  0x91   : > { %1802 = shalt.err (!%p1799_p9)
}
  0x92   : > { %s1949_s2 = smov 128   ;;  %s1950_s28 = smov 8  }
  0x93   : > { %s2858_s12 = smov 256   ;;  %p2859_p1 = scmp.ne.s32.totalorder %s2853_s14, 0 }
  0x94   : > { %1590 = dma.hbm_to_vmem [thread:$0]  (!%p2855_p10), %s2171_s13, 256, %s2173_s19, %s294_s16, %s2858_s12, %s1949_s2, %s1950_s28  }
  0x95   : > { %316 = sbr.rel (%p2859_p1) target bundleno = 352 (0x160), region = 36  ;;  %s2203_s29 = sand.u32 (!%p2859_p1), 1, %s1929_s22  }
  0x96   : > { %s2206_s0 = sshll.u32 (!%p2859_p1), %s2203_s29, 2  ;;  %s319_s20 = scalar_lea.sflag (!%p2859_p1), [#allocation3], %s2203_s29 }
  0x97   : > { %s322_s18 = scalar_lea.vmem (!%p2859_p1), [#allocation2], %s2206_s0  ;;  %p2860_p5 = scmp.ne.s32.totalorder (!%p2859_p1), %s2847_s7, 0 }
  0x9c   : > { %1904 = dma.done.wait (%p2860_p5), %s319_s20, 64  }
  0x9d   : > { %1906 = vsyncadd (%p2860_p5), %s319_s20, 4294967232  ;;  %s327_s10 = sand.u32 1, %s2018_s25   ;;  %s1526_s11 = sshll.u32 %s2203_s29, 6 }
  0x9e   : > { %s328_s14 = scalar_lea.sflag [#allocation6], %s327_s10  ;;  %s2218_s13 = scalar_lea.vmem [#allocation5], %s1526_s11 }
  0x9f   : > { %1908 = dma.done.wait (%p2860_p5), %s328_s14, 1088  }
  0xa0   : > { %1910 = vsyncadd (%p2860_p5), %s328_s14, 4294966208  ;;  %s1528_s19 = sshll.u32 %s2203_s29, 4  ;;  %s340_s16 = scalar_lea.vmem [#allocation7], %s2206_s0 }
  0xa1   : > { %s346_s30 = scalar_lea.sflag [#allocation9], %s2203_s29  ;;  %s2229_s1 = scalar_lea.vmem [#allocation8], %s1528_s19 }
  0xa2   : > { %1912 = dma.done.wait (%p2860_p5), %s346_s30, 256  }
  0xa3   : > { %1914 = vsyncadd (%p2860_p5), %s346_s30, 4294967040  ;;  %v874_v0 = vlaneseq  ;;  %v1951_v1 = vmov 1966171168   ;;  %v2239_v4 = vld [vmem:[%s2218_s13] sm:$0xff]  ;;  %v2242_v5 = vld [vmem:[%s2218_s13 + $0x8] sm:$0xff]  ;;  %v1952_v17 = vmov 0  }
  0xa4   : > { %v932_v2 = vunpack.c.l.s4 %v1951_v1  ;;  %v422_v6 = vrot.slane %v2239_v4, 7  ;;  %v423_v7 = vrot.slane %v2242_v5, 7  ;;  %v2247_v8 = vld [vmem:[%s2218_s13 + $0x20] sm:$0xff]  ;;  %v2250_v10 = vld [vmem:[%s2218_s13 + $0x28] sm:$0xff]  ;;  %s2544_s7 = scalar_lea.vmem [#allocation11], %s2206_s0  ;;  %s2580_s23 = scalar_lea.vmem [#allocation13], %s1528_s19 }
  0xa5   : > { %v2236_v3 = vshrl.u32 %v874_v0, 7  ;;  %v424_v11 = vrot.slane %v2247_v8, 7  ;;  %v858_v12 = vld [vmem:[%s340_s16] sm:$0x3]  ;;  %v425_v14 = vrot.slane %v2250_v10, 7  ;;  %s1293_s26 = sshll.u32 %s2544_s7, 4  ;;  %s2643_s26 = int_to_ptr.vmem [resolvable:$true] %s1293_s26 }
  0xa6   : > { %v933_v9 = vunpack.c.0.s8 %v932_v2  ;;  %vm430_vm0 = vcmp.gt.f32.partialorder %v2239_v4, %v422_v6  ;;  %vm431_vm1 = vcmp.gt.f32.partialorder %v2242_v5, %v423_v7  ;;  %v1536_v24 = vmul.f32 -1.442695, %v858_v12  ;;  %v859_v57 = vld [vmem:[%s340_s16 + $0x2] sm:$0x3]  ;;  %s1561_s17 = sshll.u32 %s2018_s25, 5  ;;  %s1309_s12 = sshll.u32 %s2580_s23, 4  ;;  %s2712_s12 = int_to_ptr.vmem [resolvable:$true] %s1309_s12 }
  0xa7   : > { %v2258_v13 = vsub.s32 0, %v2236_v3  ;;  %v434_v15 = vsel %vm430_vm0, %v2239_v4, %v422_v6  ;;  %v435_v16 = vsel %vm431_vm1, %v2242_v5, %v423_v7  ;;  %v438_v18 = vsel %vm430_vm0, 1, %v1952_v17  ;;  %s2662_s28 = scalar_lea.hbm %s2832_s5, %s1561_s17  ;;  %s1563_s20 = sshll.u32 %s2018_s25, 7 }
  0xa8   : > { %v439_v19 = vsel %vm431_vm1, 1, %v1952_v17  ;;  %v446_v20 = vrot.slane %v434_v15, 7  ;;  %v447_v21 = vrot.slane %v435_v16, 7  ;;  %v462_v22 = vrot.slane %v438_v18, 7  ;;  %s1803_s11 = scalar_lea.vmem %s2643_s26, 64  ;;  %p2891_p12 = scmp.ne.s32.totalorder %s2848_s8, 0 }
  0xa9   : > { %v463_v23 = vrot.slane %v439_v19, 7  ;;  %v2264_v25 = vsub.s32 1, %v2236_v3  ;;  %vm2267_vm2 = vcmp.gt.f32.partialorder %v2247_v8, %v424_v11  ;;  %vm2272_vm3 = vcmp.gt.f32.partialorder %v2250_v10, %v425_v14  ;;  %p1804_p10 = scmp.ne.s32.totalorder %s2643_s26, %s1803_s11  ;;  %s1953_s14 = smov [#allocation11]  }
  0xaa   : > { %vm454_vm4 = vcmp.gt.f32.partialorder %v2239_v4, %v446_v20  ;;  %vm455_vm5 = vcmp.gt.f32.partialorder %v2242_v5, %v447_v21  ;;  %v436_v28 = vsel %vm2267_vm2, %v2247_v8, %v424_v11  ;;  %v437_v29 = vsel %vm2272_vm3, %v2250_v10, %v425_v14 }
  0xab   : > { %v458_v30 = vsel %vm454_vm4, %v2239_v4, %v446_v20  ;;  %v459_v31 = vsel %vm455_vm5, %v2242_v5, %v447_v21  ;;  %v466_v32 = vsel %vm454_vm4, 2, %v462_v22  ;;  %v467_v33 = vsel %vm455_vm5, 2, %v463_v23  ;;  %p1805_p3 = pnand %p1804_p10, %p2891_p12 }
  0xac   : > { %v474_v34 = vrot.slane %v458_v30, 7  ;;  %v475_v35 = vrot.slane %v459_v31, 7  ;;  %v490_v36 = vrot.slane %v466_v32, 7  ;;  %v491_v37 = vrot.slane %v467_v33, 7 }
  0xad   : > { %1651 = vpow2.f32 %v1536_v24  ;;  %v2287_v38 = vsub.s32 %v933_v9, %v2236_v3  ;;  %v448_v39 = vrot.slane %v436_v28, 7  ;;  %v449_v40 = vrot.slane %v437_v29, 7  ;;  %p1806_p8 = pneg %p1805_p3 }
  0xae   : > { %vm482_vm6 = vcmp.gt.f32.partialorder %v2239_v4, %v474_v34  ;;  %vm483_vm7 = vcmp.gt.f32.partialorder %v2242_v5, %v475_v35  ;;  %v440_v41 = vsel %vm2267_vm2, 1, %v1952_v17  ;;  %v441_v42 = vsel %vm2272_vm3, 1, %v1952_v17 }
  0xaf   : > { %v486_v43 = vsel %vm482_vm6, %v2239_v4, %v474_v34  ;;  %v487_v44 = vsel %vm483_vm7, %v2242_v5, %v475_v35  ;;  %v494_v45 = vsel %vm482_vm6, 3, %v490_v36  ;;  %v495_v46 = vsel %vm483_vm7, 3, %v491_v37 }
  0xb0   : > { %v502_v47 = vrot.slane %v486_v43, 7  ;;  %v503_v48 = vrot.slane %v487_v44, 7  ;;  %v518_v49 = vrot.slane %v494_v45, 7  ;;  %v519_v50 = vrot.slane %v495_v46, 7  ;;  %v2355_v45 = vld [vmem:[%s2218_s13 + $0x10] sm:$0xff]  ;;  %v2358_v46 = vld [vmem:[%s2218_s13 + $0x18] sm:$0xff] }
  0xb1   : > { %vm2298_vm8 = vcmp.gt.f32.partialorder %v2247_v8, %v448_v39  ;;  %vm2303_vm9 = vcmp.gt.f32.partialorder %v2250_v10, %v449_v40  ;;  %v464_v53 = vrot.slane %v440_v41, 7  ;;  %v465_v54 = vrot.slane %v441_v42, 7 }
  0xb2   : > { %vm510_vm10 = vcmp.gt.f32.partialorder %v2239_v4, %v502_v47  ;;  %vm511_vm11 = vcmp.gt.f32.partialorder %v2242_v5, %v503_v48  ;;  %v460_v55 = vsel %vm2298_vm8, %v2247_v8, %v448_v39  ;;  %v461_v56 = vsel %vm2303_vm9, %v2250_v10, %v449_v40 }
  0xb3   : > { %v514_v58 = vsel %vm510_vm10, %v2239_v4, %v502_v47  ;;  %v515_v59 = vsel %vm511_vm11, %v2242_v5, %v503_v48  ;;  %v522_v60 = vsel %vm510_vm10, 4, %v518_v49  ;;  %v523_v61 = vsel %vm511_vm11, 4, %v519_v50 }
  0xb4   : > { %v530_v62 = vrot.slane %v514_v58, 7  ;;  %v531_v63 = vrot.slane %v515_v59, 7  ;;  %v546_v1 = vrot.slane %v522_v60, 7  ;;  %v547_v2 = vrot.slane %v523_v61, 7 }
  0xb5   : > { %v468_v6 = vsel %vm2298_vm8, 2, %v464_v53  ;;  %v476_v7 = vrot.slane %v460_v55, 7  ;;  %v1537_v9 = vmul.f32 -1.442695, %v859_v57  ;;  %v1036_v11 = vsub.s32 4, %v2236_v3 }
  0xb6   : > { %vm538_vm12 = vcmp.gt.f32.partialorder %v2239_v4, %v530_v62  ;;  %vm539_vm13 = vcmp.gt.f32.partialorder %v2242_v5, %v531_v63  ;;  %v469_v12 = vsel %vm2303_vm9, 2, %v465_v54  ;;  %v477_v14 = vrot.slane %v461_v56, 7  ;;  %v1014_v59 = vld [vmem:[%s322_s18] ss:$2 sm:$0x3] }
  0xb7   : > { %v1652_v15 = vpop.eup %1651  ;;  %v542_v16 = vsel %vm538_vm12, %v2239_v4, %v530_v62  ;;  %v543_v17 = vsel %vm539_vm13, %v2242_v5, %v531_v63  ;;  %v550_v18 = vsel %vm538_vm12, 5, %v546_v1  ;;  %v551_v19 = vsel %vm539_vm13, 5, %v547_v2 }
  0xb8   : > { %v558_v20 = vrot.slane %v542_v16, 7  ;;  %v559_v21 = vrot.slane %v543_v17, 7  ;;  %v574_v22 = vrot.slane %v550_v18, 7  ;;  %v575_v23 = vrot.slane %v551_v19, 7 }
  0xb9   : > { %vm2329_vm14 = vcmp.gt.f32.partialorder %v2247_v8, %v476_v7  ;;  %vm2334_vm15 = vcmp.gt.f32.partialorder %v2250_v10, %v477_v14  ;;  %v492_v27 = vrot.slane %v468_v6, 7  ;;  %v493_v28 = vrot.slane %v469_v12, 7 }
  0xba   : > { %vm566_vm0 = vcmp.gt.f32.partialorder %v2239_v4, %v558_v20  ;;  %vm567_vm1 = vcmp.gt.f32.partialorder %v2242_v5, %v559_v21  ;;  %v488_v29 = vsel %vm2329_vm14, %v2247_v8, %v476_v7  ;;  %v489_v30 = vsel %vm2334_vm15, %v2250_v10, %v477_v14 }
  0xbb   : > { %v570_v31 = vsel %vm566_vm0, %v2239_v4, %v558_v20  ;;  %v571_v32 = vsel %vm567_vm1, %v2242_v5, %v559_v21  ;;  %v578_v33 = vsel %vm566_vm0, 6, %v574_v22  ;;  %v579_v34 = vsel %vm567_vm1, 6, %v575_v23 }
  0xbc   : > { %v586_v35 = vrot.slane %v570_v31, 7  ;;  %v587_v36 = vrot.slane %v571_v32, 7  ;;  %v602_v37 = vrot.slane %v578_v33, 7  ;;  %v603_v39 = vrot.slane %v579_v34, 7 }
  0xbd   : > { %v866_v40 = vadd.f32 1.0, %v1652_v15  ;;  %v504_v41 = vrot.slane %v488_v29, 7  ;;  %v505_v42 = vrot.slane %v489_v30, 7  ;;  %1653 = vpow2.f32 %v1537_v9 }
  0xbe   : > { %vm594_vm2 = vcmp.gt.f32.partialorder %v2239_v4, %v586_v35  ;;  %vm595_vm3 = vcmp.gt.f32.partialorder %v2242_v5, %v587_v36  ;;  %v496_v43 = vsel %vm2329_vm14, 3, %v492_v27  ;;  %v497_v44 = vsel %vm2334_vm15, 3, %v493_v28 }
  0xbf   : > { %v598_v47 = vsel %vm594_vm2, %v2239_v4, %v586_v35  ;;  %v599_v48 = vsel %vm595_vm3, %v2242_v5, %v587_v36  ;;  %v606_v49 = vsel %vm594_vm2, 7, %v602_v37  ;;  %v607_v50 = vsel %vm595_vm3, 7, %v603_v39 }
  0xc0   : > { %v614_v51 = vrot.slane %v598_v47, 7  ;;  %v615_v52 = vrot.slane %v599_v48, 7  ;;  %v630_v53 = vrot.slane %v606_v49, 7  ;;  %v631_v54 = vrot.slane %v607_v50, 7 }
  0xc1   : > { %vm2363_vm4 = vcmp.gt.f32.partialorder %v2247_v8, %v504_v41  ;;  %vm2368_vm5 = vcmp.gt.f32.partialorder %v2250_v10, %v505_v42  ;;  %v520_v4 = vrot.slane %v496_v43, 7  ;;  %v521_v57 = vrot.slane %v497_v44, 7 }
  0xc2   : > { %vm622_vm6 = vcmp.gt.f32.partialorder %v2355_v45, %v614_v51  ;;  %vm623_vm7 = vcmp.gt.f32.partialorder %v2358_v46, %v615_v52  ;;  %v516_v5 = vsel %vm2363_vm4, %v2247_v8, %v504_v41  ;;  %v517_v58 = vsel %vm2368_vm5, %v2250_v10, %v505_v42 }
  0xc3   : > { %v626_v60 = vsel %vm622_vm6, %v2355_v45, %v614_v51  ;;  %v627_v61 = vsel %vm623_vm7, %v2358_v46, %v615_v52  ;;  %v634_v62 = vsel %vm622_vm6, 8, %v630_v53  ;;  %v635_v63 = vsel %vm623_vm7, 8, %v631_v54 }
  0xc4   : > { %v642_v1 = vrot.slane %v626_v60, 7  ;;  %v643_v2 = vrot.slane %v627_v61, 7  ;;  %v658_v6 = vrot.slane %v634_v62, 7  ;;  %v659_v7 = vrot.slane %v635_v63, 7  ;;  %v2449_v63 = vld [vmem:[%s2229_s1] sm:$0xff] }
  0xc5   : > { %1655 = vrcp.f32 %v866_v40  ;;  %v524_v9 = vsel %vm2363_vm4, 4, %v520_v4  ;;  %v525_v12 = vsel %vm2368_vm5, 4, %v521_v57  ;;  %v2389_v14 = vrot.slane %v1014_v59, %v2258_v13 }
  0xc6   : > { %vm650_vm8 = vcmp.gt.f32.partialorder %v2355_v45, %v642_v1  ;;  %vm651_vm9 = vcmp.gt.f32.partialorder %v2358_v46, %v643_v2  ;;  %v532_v15 = vrot.slane %v516_v5, 7  ;;  %v533_v16 = vrot.slane %v517_v58, 7 }
  0xc7   : > { %v1654_v17 = vpop.eup %1653  ;;  %v654_v18 = vsel %vm650_vm8, %v2355_v45, %v642_v1  ;;  %v655_v19 = vsel %vm651_vm9, %v2358_v46, %v643_v2  ;;  %v662_v20 = vsel %vm650_vm8, 9, %v658_v6  ;;  %v663_v21 = vsel %vm651_vm9, 9, %v659_v7 }
  0xc8   : > { %v670_v22 = vrot.slane %v654_v18, 7  ;;  %v671_v23 = vrot.slane %v655_v19, 7  ;;  %v686_v24 = vrot.slane %v662_v20, 7  ;;  %v687_v26 = vrot.slane %v663_v21, 7 }
  0xc9   : > { %vm2396_vm10 = vcmp.gt.f32.partialorder %v2247_v8, %v532_v15  ;;  %vm2401_vm11 = vcmp.gt.f32.partialorder %v2250_v10, %v533_v16  ;;  %v548_v29 = vrot.slane %v524_v9, 7  ;;  %v549_v30 = vrot.slane %v525_v12, 7 }
  0xca   : > { %vm678_vm12 = vcmp.gt.f32.partialorder %v2355_v45, %v670_v22  ;;  %vm679_vm13 = vcmp.gt.f32.partialorder %v2358_v46, %v671_v23  ;;  %v544_v31 = vsel %vm2396_vm10, %v2247_v8, %v532_v15  ;;  %v545_v32 = vsel %vm2401_vm11, %v2250_v10, %v533_v16 }
  0xcb   : > { %v682_v33 = vsel %vm678_vm12, %v2355_v45, %v670_v22  ;;  %v683_v34 = vsel %vm679_vm13, %v2358_v46, %v671_v23  ;;  %v690_v35 = vsel %vm678_vm12, 10, %v686_v24  ;;  %v691_v36 = vsel %vm679_vm13, 10, %v687_v26 }
  0xcc   : > { %v698_v37 = vrot.slane %v682_v33, 7  ;;  %v699_v39 = vrot.slane %v683_v34, 7  ;;  %v714_v40 = vrot.slane %v690_v35, 7  ;;  %v715_v41 = vrot.slane %v691_v36, 7 }
  0xcd   : > { %v560_v42 = vrot.slane %v544_v31, 7  ;;  %v561_v43 = vrot.slane %v545_v32, 7  ;;  %v2415_v44 = vadd.f32 1.0, %v1654_v17  ;;  %v2418_v47 = vrot.slane %v1014_v59, %v2264_v25 }
  0xce   : > { %vm706_vm14 = vcmp.gt.f32.partialorder %v2355_v45, %v698_v37  ;;  %vm707_vm15 = vcmp.gt.f32.partialorder %v2358_v46, %v699_v39  ;;  %v552_v48 = vsel %vm2396_vm10, 5, %v548_v29  ;;  %v553_v49 = vsel %vm2401_vm11, 5, %v549_v30 }
  0xcf   : > { %v2426_v50 = vpop.eup %1655  ;;  %v710_v51 = vsel %vm706_vm14, %v2355_v45, %v698_v37  ;;  %v711_v52 = vsel %vm707_vm15, %v2358_v46, %v699_v39  ;;  %v718_v53 = vsel %vm706_vm14, 11, %v714_v40  ;;  %v719_v54 = vsel %vm707_vm15, 11, %v715_v41 }
  0xd0   : > { %v726_v55 = vrot.slane %v710_v51, 7  ;;  %v727_v56 = vrot.slane %v711_v52, 7  ;;  %v742_v4 = vrot.slane %v718_v53, 7  ;;  %v743_v57 = vrot.slane %v719_v54, 7  ;;  %v2492_v54 = vld [vmem:[%s2218_s13 + $0x30] sm:$0xff] }
  0xd1   : > { %vm2431_vm0 = vcmp.gt.f32.partialorder %v2247_v8, %v560_v42  ;;  %vm2436_vm1 = vcmp.gt.f32.partialorder %v2250_v10, %v561_v43  ;;  %v576_v59 = vrot.slane %v552_v48, 7  ;;  %v577_v60 = vrot.slane %v553_v49, 7 }
  0xd2   : > { %vm734_vm2 = vcmp.gt.f32.partialorder %v2355_v45, %v726_v55  ;;  %vm735_vm3 = vcmp.gt.f32.partialorder %v2358_v46, %v727_v56  ;;  %v572_v61 = vsel %vm2431_vm0, %v2247_v8, %v560_v42  ;;  %v573_v62 = vsel %vm2436_vm1, %v2250_v10, %v561_v43 }
  0xd3   : > { %v738_v1 = vsel %vm734_vm2, %v2355_v45, %v726_v55  ;;  %v739_v2 = vsel %vm735_vm3, %v2358_v46, %v727_v56  ;;  %v746_v6 = vsel %vm734_vm2, 12, %v742_v4  ;;  %v747_v7 = vsel %vm735_vm3, 12, %v743_v57  ;;  %v2495_v55 = vld [vmem:[%s2218_s13 + $0x38] sm:$0xff]  ;;  %v2498_v57 = vld [vmem:[%s2229_s1 + $0x8] sm:$0xff]  ;;  %s1807_s13 = sshll.u32 %s1953_s14, 4  ;;  %s1808_s13 = int_to_ptr.vmem [resolvable:$false] %s1807_s13 }
  0xd4   : > { %v754_v9 = vrot.slane %v738_v1, 7  ;;  %v755_v12 = vrot.slane %v739_v2, 7  ;;  %v770_v15 = vrot.slane %v746_v6, 7  ;;  %v771_v16 = vrot.slane %v747_v7, 7  ;;  %s1809_s19 = scalar_lea.vmem %s1808_s13, 128  ;;  %p1810_p13 = scmp.lt.s32.totalorder %s2643_s26, %s1808_s13 }
  0xd5   : > { %v877_v17 = vrot.slane %v2426_v50, %v2258_v13  ;;  %v588_v18 = vrot.slane %v572_v61, 7  ;;  %v589_v19 = vrot.slane %v573_v62, 7  ;;  %v1033_v20 = vrot.slane %v2449_v63, %v2258_v13  ;;  %p1811_p11 = scmp.lt.s32.totalorder %s1809_s19, %s1803_s11 }
  0xd6   : > { %vm762_vm4 = vcmp.gt.f32.partialorder %v2355_v45, %v754_v9  ;;  %vm763_vm5 = vcmp.gt.f32.partialorder %v2358_v46, %v755_v12  ;;  %v580_v21 = vsel %vm2431_vm0, 6, %v576_v59  ;;  %v581_v22 = vsel %vm2436_vm1, 6, %v577_v60 }
  0xd7   : > { %v766_v23 = vsel %vm762_vm4, %v2355_v45, %v754_v9  ;;  %v767_v24 = vsel %vm763_vm5, %v2358_v46, %v755_v12  ;;  %v774_v26 = vsel %vm762_vm4, 13, %v770_v15  ;;  %v775_v27 = vsel %vm763_vm5, 13, %v771_v16  ;;  %v1538_v12 = vld [vmem:[%s322_s18 + $0x1] ss:$2 sm:$0x3]  ;;  %s2682_s18 = scalar_lea.sflag [#allocation12], %s327_s10  ;;  %p1812_p0 = por %p1811_p11, %p1810_p13 }
  0xd8   : > { %v782_v28 = vrot.slane %v766_v23, 7  ;;  %v783_v29 = vrot.slane %v767_v24, 7  ;;  %v798_v30 = vrot.slane %v774_v26, 7  ;;  %v799_v31 = vrot.slane %v775_v27, 7 }
  0xd9   : > { %vm2466_vm6 = vcmp.gt.f32.partialorder %v2247_v8, %v588_v18  ;;  %vm2471_vm7 = vcmp.gt.f32.partialorder %v2250_v10, %v589_v19  ;;  %v604_v34 = vrot.slane %v580_v21, 7  ;;  %v605_v35 = vrot.slane %v581_v22, 7  ;;  %p1813_p2 = pnand %p1812_p0, %p1806_p8 }
  0xda   : > { %vm790_vm8 = vcmp.gt.f32.partialorder %v2355_v45, %v782_v28  ;;  %vm791_vm9 = vcmp.gt.f32.partialorder %v2358_v46, %v783_v29  ;;  %v600_v36 = vsel %vm2466_vm6, %v2247_v8, %v588_v18  ;;  %v601_v37 = vsel %vm2471_vm7, %v2250_v10, %v589_v19 }
  0xdb   : > { %v794_v39 = vsel %vm790_vm8, %v2355_v45, %v782_v28  ;;  %v795_v40 = vsel %vm791_vm9, %v2358_v46, %v783_v29  ;;  %v802_v41 = vsel %vm790_vm8, 14, %v798_v30  ;;  %v803_v42 = vsel %vm791_vm9, 14, %v799_v31 }
  0xdc   : > { %v810_v43 = vrot.slane %v794_v39, 7  ;;  %v811_v48 = vrot.slane %v795_v40, 7  ;;  %v826_v49 = vrot.slane %v802_v41, 7  ;;  %v827_v51 = vrot.slane %v803_v42, 7 }
  0xdd   : > { %v608_v8 = vsel %vm2466_vm6, 7, %v604_v34  ;;  %v609_v52 = vsel %vm2471_vm7, 7, %v605_v35  ;;  %v616_v53 = vrot.slane %v600_v36, 7  ;;  %v617_v10 = vrot.slane %v601_v37, 7 }
  0xde   : > { %vm818_vm10 = vcmp.gt.f32.partialorder %v2355_v45, %v810_v43  ;;  %vm819_vm11 = vcmp.gt.f32.partialorder %v2358_v46, %v811_v48  ;;  %v632_v56 = vrot.slane %v608_v8, 7  ;;  %v633_v4 = vrot.slane %v609_v52, 7 }
  0xdf   : > { %v822_v5 = vsel %vm818_vm10, %v2355_v45, %v810_v43  ;;  %v823_v58 = vsel %vm819_vm11, %v2358_v46, %v811_v48  ;;  %v830_v59 = vsel %vm818_vm10, 15, %v826_v49  ;;  %v831_v60 = vsel %vm819_vm11, 15, %v827_v51 }
  0xe0   : > { %v1532_v61 = vmul.f32 -1.442695, %v822_v5  ;;  %v1533_v62 = vmul.f32 -1.442695, %v823_v58  ;;  %v972_v1 = vadd.s32 1, %v830_v59  ;;  %v973_v2 = vadd.s32 1, %v831_v60 }
  0xe1   : > { %vm2503_vm12 = vcmp.lt.s32.totalorder %v874_v0, 256  ;;  %vm624_vm13 = vcmp.gt.f32.partialorder %v2492_v54, %v616_v53  ;;  %vm625_vm14 = vcmp.gt.f32.partialorder %v2495_v55, %v617_v10  ;;  %v1037_v45 = vrot.slane %v2449_v63, %v1036_v11 }
  0xe2   : > { %v1041_v46 = vrot.slane %v2498_v57, %v2258_v13  ;;  %1657 = vpow2.f32 %v1532_v61  ;;  %v976_v7 = vcombine.high %v972_v1, %v973_v2  ;;  %v628_v9 = vsel %vm624_vm13, %v2492_v54, %v616_v53 }
  0xe3   : > { %v629_v0 = vsel %vm625_vm14, %v2495_v55, %v617_v10  ;;  %1659 = vpow2.f32 %v1533_v62  ;;  %v636_v15 = vsel %vm624_vm13, 8, %v632_v56  ;;  %v637_v16 = vsel %vm625_vm14, 8, %v633_v4 }
  0xe4   : > { %v644_v18 = vrot.slane %v628_v9, 7  ;;  %v983_v19 = vrot.slane %v976_v7, %v2287_v38  ;;  %v645_v21 = vrot.slane %v629_v0, 7  ;;  %v660_v22 = vrot.slane %v636_v15, 7 }
  0xe5   : > { %v661_v23 = vrot.slane %v637_v16, 7  ;;  %v1045_v24 = vrot.slane %v2498_v57, %v1036_v11  ;;  %vm1046_vm0 = vcmask 1041409   ;;  %v2524_v26 = vrot.slane %v1538_v12, %v2258_v13 }
  0xe6   : > { %vm652_vm15 = vcmp.gt.f32.partialorder %v2492_v54, %v644_v18  ;;  %v984_v27 = vcombine.high %v983_v19, %v983_v19  ;;  %vm653_vm1 = vcmp.gt.f32.partialorder %v2495_v55, %v645_v21  ;;  %v1047_v36 = vsel %vm1046_vm0, %v1041_v46, %v1033_v20 }
  0xe7   : > { %v656_v28 = vsel %vm652_vm15, %v2492_v54, %v644_v18  ;;  %v664_v29 = vsel %vm652_vm15, 9, %v660_v22  ;;  %v657_v30 = vsel %vm653_vm1, %v2495_v55, %v645_v21  ;;  %v665_v31 = vsel %vm653_vm1, 9, %v661_v23 }
  0xe8   : > { %v672_v32 = vrot.slane %v656_v28, 7  ;;  %v688_v33 = vrot.slane %v664_v29, 7  ;;  %v991_v34 = vrot.slane %v984_v27, %v2287_v38  ;;  %v673_v35 = vrot.slane %v657_v30, 7 }
  0xe9   : > { %v689_v11 = vrot.slane %v665_v31, 7  ;;  %v1048_v37 = vsel %vm1046_vm0, %v1045_v24, %v1037_v45  ;;  %v1051_v39 = vsub.f32 %v2389_v14, %v1047_v36  ;;  %v2538_v40 = vrot.slane %v1538_v12, %v2264_v25 }
  0xea   : > { %vm680_vm2 = vcmp.gt.f32.partialorder %v2492_v54, %v672_v32  ;;  %v992_v41 = vcombine.high %v991_v34, %v991_v34  ;;  %vm681_vm3 = vcmp.gt.f32.partialorder %v2495_v55, %v673_v35  ;;  %v1052_v10 = vsub.f32 %v2418_v47, %v1048_v37 }
  0xeb   : > { %v684_v42 = vsel %vm680_vm2, %v2492_v54, %v672_v32  ;;  %v692_v43 = vsel %vm680_vm2, 10, %v688_v33  ;;  %v685_v48 = vsel %vm681_vm3, %v2495_v55, %v673_v35  ;;  %v693_v49 = vsel %vm681_vm3, 10, %v689_v11 }
  0xec   : > { %v700_v51 = vrot.slane %v684_v42, 7  ;;  %v716_v20 = vrot.slane %v692_v43, 7  ;;  %v1658_v8 = vpop.eup %1657  ;;  %1010 = vst.msk [vmem:[%s2544_s7] sm:$0x3] %vm2503_vm12, %v992_v41  ;;  %v701_v52 = vrot.slane %v685_v48, 7  ;;  %v717_v53 = vrot.slane %v693_v49, 7 }
  0xed   : > { %v1097_v56 = vrot.slane %v2449_v63, %v2264_v25  ;;  %v1660_v4 = vpop.eup %1659  ;;  %v846_v5 = vadd.f32 1.0, %v1658_v8  ;;  %v1100_v58 = vsub.s32 5, %v2236_v3  ;;  %v1105_v59 = vrot.slane %v2498_v57, %v2264_v25 }
  0xee   : > { %vm708_vm4 = vcmp.gt.f32.partialorder %v2492_v54, %v700_v51  ;;  %v847_v60 = vadd.f32 1.0, %v1660_v4  ;;  %vm709_vm5 = vcmp.gt.f32.partialorder %v2495_v55, %v701_v52  ;;  %v1055_v0 = vcombine.low %v1051_v39, %v1052_v10 }
  0xef   : > { %v712_v61 = vsel %vm708_vm4, %v2492_v54, %v700_v51  ;;  %v720_v62 = vsel %vm708_vm4, 11, %v716_v20  ;;  %1661 = vrcp.f32 %v846_v5  ;;  %v713_v1 = vsel %vm709_vm5, %v2495_v55, %v701_v52 }
  0xf0   : > { %v721_v2 = vsel %vm709_vm5, 11, %v717_v53  ;;  %v728_v45 = vrot.slane %v712_v61, 7  ;;  %1663 = vrcp.f32 %v847_v60  ;;  %v729_v46 = vrot.slane %v713_v1, 7 }
  0xf1   : > { %v744_v7 = vrot.slane %v720_v62, 7  ;;  %v745_v9 = vrot.slane %v721_v2, 7  ;;  %v1101_v12 = vrot.slane %v2449_v63, %v1100_v58  ;;  %v1109_v15 = vrot.slane %v2498_v57, %v1100_v58 }
  0xf2   : > { %vm736_vm6 = vcmp.gt.f32.partialorder %v2492_v54, %v728_v45  ;;  %vm737_vm7 = vcmp.gt.f32.partialorder %v2495_v55, %v729_v46  ;;  %v1110_v19 = vsel %vm1046_vm0, %v1105_v59, %v1097_v56  ;;  %v1062_v29 = vrot.slane %v1055_v0, %v2287_v38 }
  0xf3   : > { %v740_v16 = vsel %vm736_vm6, %v2492_v54, %v728_v45  ;;  %v748_v18 = vsel %vm736_vm6, 12, %v744_v7  ;;  %v741_v21 = vsel %vm737_vm7, %v2495_v55, %v729_v46  ;;  %v749_v22 = vsel %vm737_vm7, 12, %v745_v9 }
  0xf4   : > { %v756_v23 = vrot.slane %v740_v16, 7  ;;  %v772_v24 = vrot.slane %v748_v18, 7  ;;  %v757_v27 = vrot.slane %v741_v21, 7  ;;  %v773_v28 = vrot.slane %v749_v22, 7 }
  0xf5   : > { %v1111_v30 = vsel %vm1046_vm0, %v1109_v15, %v1101_v12  ;;  %v881_v31 = vrot.slane %v2426_v50, %v2264_v25  ;;  %v1114_v32 = vsub.f32 %v2524_v26, %v1110_v19  ;;  %v1070_v11 = vrot.slane %v1062_v29, %v2287_v38 }
  0xf6   : > { %vm764_vm8 = vcmp.gt.f32.partialorder %v2492_v54, %v756_v23  ;;  %v1115_v33 = vsub.f32 %v2538_v40, %v1111_v30  ;;  %vm765_vm9 = vcmp.gt.f32.partialorder %v2495_v55, %v757_v27  ;;  %1665 = vrcp.f32 %v2415_v44 }
  0xf7   : > { %v768_v34 = vsel %vm764_vm8, %v2492_v54, %v756_v23  ;;  %v776_v35 = vsel %vm764_vm8, 13, %v772_v24  ;;  %v769_v36 = vsel %vm765_vm9, %v2495_v55, %v757_v27  ;;  %v777_v37 = vsel %vm765_vm9, 13, %v773_v28  ;;  %1080 = vst.msk [vmem:[%s2580_s23] ss:$4 sm:$0x3] %vm2503_vm12, %v1070_v11 }
  0xf8   : > { %v784_v39 = vrot.slane %v768_v34, 7  ;;  %v800_v41 = vrot.slane %v776_v35, 7  ;;  %v785_v42 = vrot.slane %v769_v36, 7  ;;  %v801_v43 = vrot.slane %v777_v37, 7 }
  0xf9   : > { %v1662_v48 = vpop.eup %1661  ;;  %v1063_v49 = vcombine.high %v1062_v29, %v1062_v29  ;;  %v1118_v51 = vcombine.low %v1114_v32, %v1115_v33  ;;  %v1149_v20 = vsub.s32 2, %v2236_v3  ;;  %v1202_v24 = vsub.s32 3, %v2236_v3 }
  0xfa   : > { %vm792_vm10 = vcmp.gt.f32.partialorder %v2492_v54, %v784_v39  ;;  %v1664_v8 = vpop.eup %1663  ;;  %v2590_v52 = vmul.f32 %v1662_v48, %v877_v17  ;;  %vm793_vm11 = vcmp.gt.f32.partialorder %v2495_v55, %v785_v42  ;;  %v1153_v17 = vsub.s32 6, %v2236_v3 }
  0xfb   : > { %v796_v44 = vsel %vm792_vm10, %v2492_v54, %v784_v39  ;;  %v804_v53 = vsel %vm792_vm10, 14, %v800_v41  ;;  %v2594_v10 = vmul.f32 %v1664_v8, %v881_v31  ;;  %v797_v56 = vsel %vm793_vm11, %v2495_v55, %v785_v42 }
  0xfc   : > { %v805_v4 = vsel %vm793_vm11, 14, %v801_v43  ;;  %v812_v5 = vrot.slane %v796_v44, 7  ;;  %v813_v58 = vrot.slane %v797_v56, 7  ;;  %v828_v59 = vrot.slane %v804_v53, 7 }
  0xfd   : > { %v829_v60 = vrot.slane %v805_v4, 7  ;;  %1667 = vrsqrt.f32 %v2590_v52  ;;  %v1150_v50 = vrot.slane %v2449_v63, %v1149_v20  ;;  %v1158_v61 = vrot.slane %v2498_v57, %v1149_v20 }
  0xfe   : > { %vm820_vm13 = vcmp.gt.f32.partialorder %v2492_v54, %v812_v5  ;;  %vm821_vm14 = vcmp.gt.f32.partialorder %v2495_v55, %v813_v58  ;;  %1669 = vrsqrt.f32 %v2594_v10  ;;  %vm900_vm15 = vcmp.eq.f32.partialorder %v2590_v52, inf }
  0xff   : > { %v824_v62 = vsel %vm820_vm13, %v2492_v54, %v812_v5  ;;  %v832_v1 = vsel %vm820_vm13, 15, %v828_v59  ;;  %v825_v2 = vsel %vm821_vm14, %v2495_v55, %v813_v58  ;;  %v833_v45 = vsel %vm821_vm14, 15, %v829_v60 }
 0x100   : > { %v1534_v46 = vmul.f32 -1.442695, %v824_v62  ;;  %v974_v7 = vadd.s32 1, %v832_v1  ;;  %v1535_v9 = vmul.f32 -1.442695, %v825_v2  ;;  %v975_v0 = vadd.s32 1, %v833_v45  ;;  %v2611_v55 = vpop.eup %1665 }
 0x101   : > { %vm902_vm1 = vcmp.eq.f32.partialorder %v2590_v52, 0.0  ;;  %v903_v12 = vand.u32 2147483648, %v2590_v52  ;;  %v1077_v54 = vrot.slane %v1063_v49, %v2287_v38  ;;  %v1125_v15 = vrot.slane %v1118_v51, %v2287_v38 }
 0x102   : > { %1671 = vpow2.f32 %v1534_v46  ;;  %v993_v16 = vcombine.high %v974_v7, %v975_v0  ;;  %v1154_v18 = vrot.slane %v2449_v63, %v1153_v17  ;;  %v1162_v19 = vrot.slane %v2498_v57, %v1153_v17 }
 0x103   : > { %1673 = vpow2.f32 %v1535_v9  ;;  %1539 = vst.msk [vmem:[%s2580_s23 + $0x8] ss:$4 sm:$0x3] %vm2503_vm12, %v1077_v54  ;;  %v1133_v21 = vrot.slane %v1125_v15, %v2287_v38  ;;  %v1126_v22 = vcombine.high %v1125_v15, %v1125_v15  ;;  %v1163_v23 = vsel %vm1046_vm0, %v1158_v61, %v1150_v50 }
 0x104   : > { %v1000_v27 = vrot.slane %v993_v16, %v2287_v38  ;;  %v1164_v28 = vsel %vm1046_vm0, %v1162_v19, %v1154_v18  ;;  %v1167_v29 = vadd.f32 %v1163_v23, %v2389_v14  ;;  %v1206_v30 = vsub.s32 7, %v2236_v3 }
 0x105   : > { %1540 = vst.msk [vmem:[%s2580_s23 + $0x1] ss:$4 sm:$0x3] %vm2503_vm12, %v1133_v21  ;;  %v1140_v31 = vrot.slane %v1126_v22, %v2287_v38  ;;  %v1168_v32 = vadd.f32 %v1164_v28, %v2418_v47  ;;  %v1203_v33 = vrot.slane %v2449_v63, %v1202_v24  ;;  %v1211_v34 = vrot.slane %v2498_v57, %v1202_v24 }
 0x106   : > { %v1001_v11 = vcombine.high %v1000_v27, %v1000_v27  ;;  %vm907_vm2 = vcmp.eq.f32.partialorder %v2594_v10, inf  ;;  %v1207_v14 = vrot.slane %v2449_v63, %v1206_v30  ;;  %v1215_v3 = vrot.slane %v2498_v57, %v1206_v30 }
 0x107   : > { %v1668_v35 = vpop.eup %1667  ;;  %vm909_vm3 = vcmp.eq.f32.partialorder %v2594_v10, 0.0  ;;  %1541 = vst.msk [vmem:[%s2580_s23 + $0x9] ss:$4 sm:$0x3] %vm2503_vm12, %v1140_v31  ;;  %v1171_v47 = vcombine.low %v1167_v29, %v1168_v32  ;;  %v1216_v37 = vsel %vm1046_vm0, %v1211_v34, %v1203_v33  ;;  %v910_v63 = vand.u32 2147483648, %v2594_v10 }
 0x108   : > { %v899_v36 = vmul.f32 %v1668_v35, %v2590_v52  ;;  %v1670_v39 = vpop.eup %1669  ;;  %v1008_v41 = vrot.slane %v1001_v11, %v2287_v38  ;;  %v1217_v57 = vsel %vm1046_vm0, %v1215_v3, %v1207_v14  ;;  %v1220_v42 = vadd.f32 %v1216_v37, %v2524_v26 }
 0x109   : > { %v906_v48 = vmul.f32 %v1670_v39, %v2594_v10  ;;  %v1178_v49 = vrot.slane %v1171_v47, %v2287_v38  ;;  %v1221_v51 = vadd.f32 %v1217_v57, %v2538_v40 }
 0x10a   : > { %v901_v43 = vsel %vm900_vm15, %v2590_v52, %v899_v36  ;;  %v1009_v20 = vcombine.high %v1008_v41, %v1008_v41 }
 0x10b   : > { %v904_v8 = vsel %vm902_vm1, %v903_v12, %v901_v43  ;;  %v908_v44 = vsel %vm907_vm2, %v2594_v10, %v906_v48  ;;  %v1186_v40 = vrot.slane %v1178_v49, %v2287_v38  ;;  %v1179_v53 = vcombine.high %v1178_v49, %v1178_v49 }
 0x10c   : > { %v1672_v26 = vpop.eup %1671  ;;  %v1224_v52 = vcombine.low %v1220_v42, %v1221_v51  ;;  %1011 = vst.msk [vmem:[%s2544_s7 + $0x2] sm:$0x3] %vm2503_vm12, %v1009_v20  ;;  %v911_v5 = vsel %vm909_vm3, %v910_v63, %v908_v44 }
 0x10d   : > { %v1674_v56 = vpop.eup %1673  ;;  %v848_v4 = vadd.f32 1.0, %v1672_v26  ;;  %v930_v59 = vcombine.high %v904_v8, %v911_v5  ;;  %1542 = vst.msk [vmem:[%s2580_s23 + $0x2] ss:$4 sm:$0x3] %vm2503_vm12, %v1186_v40  ;;  %v1193_v60 = vrot.slane %v1179_v53, %v2287_v38 }
 0x10e   : > { %v849_v58 = vadd.f32 1.0, %v1674_v56  ;;  %v1231_v50 = vrot.slane %v1224_v52, %v2287_v38 }
 0x10f   : > { %1816 = shalt.err (!%p1813_p2)
}
 0x110   : > { %s1817_s10 = scalar_lea.hbm %s2662_s28, 64  ;;  %s1821_s1 = scalar_lea.hbm %s2832_s5, 128 }
 0x111   : > { %p1818_p7 = scmp.ne.s32.totalorder %s2662_s28, %s1817_s10  ;;  %p1822_p9 = scmp.lt.u32.totalorder %s2662_s28, %s2832_s5 }
 0x112   : > { %p1823_p1 = scmp.lt.u32.totalorder %s1821_s1, %s1817_s10  ;;  %p1825_p10 = scmp.lt.u32.totalorder %s1817_s10, %s2662_s28 }
 0x113   : > { %p1819_p4 = pnand %p1818_p7, %p2891_p12 }
 0x114   : > { %p1824_p5 = por %p1823_p1, %p1822_p9 }
 0x115   : > { %p1820_p6 = pneg %p1819_p4 }
 0x116   : > { %p1826_p3 = por %p1825_p10, %p1824_p5 }
 0x118   : > { %p1827_p8 = pnand %p1826_p3, %p1820_p6 }
 0x11a   : > { %1830 = shalt.err (!%p1827_p8)
}
 0x11b   : > { %s1954_s2 = smov 32   ;;  %s1955_s11 = smov 64   ;;  %1675 = vrcp.f32 %v848_v4  ;;  %v937_v10 = vrot.slane %v930_v59, %v2287_v38  ;;  %1543 = vst.msk [vmem:[%s2580_s23 + $0xa] ss:$4 sm:$0x3] %vm2503_vm12, %v1193_v60  ;;  %v1239_v17 = vrot.slane %v1231_v50, %v2287_v38  ;;  %v1232_v61 = vcombine.high %v1231_v50, %v1231_v50 }
 0x11c   : > { %s1956_s14 = smov 2   ;;  %1677 = vrcp.f32 %v849_v58  ;;  %s1831_s19 = scalar_lea.vmem %s2712_s12, 256 }
 0x11d   : > { %1573 = dma.vmem_to_hbm [thread:$0]  (%p2891_p12), %s2643_s26, 64, %s2662_s28, %s2682_s18, %s1954_s2, %s1955_s11, %s1956_s14   ;;  %v938_v62 = vcombine.high %v937_v10, %v937_v10  ;;  %v1246_v1 = vrot.slane %v1232_v61, %v2287_v38 }
 0x11e   : > { %s2723_s28 = scalar_lea.hbm %s2833_s6, %s1563_s20  ;;  %1544 = vst.msk [vmem:[%s2580_s23 + $0x3] ss:$4 sm:$0x3] %vm2503_vm12, %v1239_v17  ;;  %p1832_p13 = scmp.ne.s32.totalorder %s2712_s12, %s1831_s19 }
 0x11f   : > { %v945_v2 = vrot.slane %v938_v62, %v2287_v38  ;;  %1545 = vst.msk [vmem:[%s2580_s23 + $0xb] ss:$4 sm:$0x3] %vm2503_vm12, %v1246_v1  ;;  %s1957_s10 = smov [#allocation13]  }
 0x120   : > { %p1833_p11 = pnand %p1832_p13, %p2891_p12  ;;  %s1835_s16 = sshll.u32 %s1957_s10, 4  ;;  %s1836_s16 = int_to_ptr.vmem [resolvable:$false] %s1835_s16 }
 0x121   : > { %s1837_s20 = scalar_lea.vmem %s1836_s16, 512  ;;  %p1838_p2 = scmp.lt.s32.totalorder %s2712_s12, %s1836_s16 }
 0x122   : > { %p1834_p0 = pneg %p1833_p11  ;;  %p1839_p7 = scmp.lt.s32.totalorder %s1837_s20, %s1831_s19 }
 0x124   : > { %p1840_p4 = por %p1839_p7, %p1838_p2 }
 0x126   : > { %p1841_p6 = pnand %p1840_p4, %p1834_p0 }
 0x128   : > { %1844 = shalt.err (!%p1841_p6)
}
 0x129   : > { %s1845_s23 = scalar_lea.hbm %s2723_s28, 256  ;;  %s1849_s7 = scalar_lea.hbm %s2833_s6, 512 }
 0x12a   : > { %p1846_p9 = scmp.ne.s32.totalorder %s2723_s28, %s1845_s23  ;;  %p1850_p10 = scmp.lt.u32.totalorder %s2723_s28, %s2833_s6 }
 0x12b   : > { %p1851_p3 = scmp.lt.u32.totalorder %s1849_s7, %s1845_s23  ;;  %p1853_p13 = scmp.lt.u32.totalorder %s1845_s23, %s2723_s28 }
 0x12c   : > { %p1847_p1 = pnand %p1846_p9, %p2891_p12 }
 0x12d   : > { %p1852_p8 = por %p1851_p3, %p1850_p10 }
 0x12e   : > { %p1848_p5 = pneg %p1847_p1 }
 0x12f   : > { %p1854_p11 = por %p1853_p13, %p1852_p8 }
 0x131   : > { %p1855_p0 = pnand %p1854_p11, %p1848_p5 }
 0x133   : > { %1858 = shalt.err (!%p1855_p0)
}
 0x134   : > { %s1958_s26 = smov 128   ;;  %s1959_s19 = smov 256   ;;  %v885_v45 = vrot.slane %v2611_v55, %v2258_v13  ;;  %v946_v46 = vcombine.high %v945_v2, %v945_v2  ;;  %v889_v7 = vrot.slane %v2611_v55, %v2264_v25  ;;  %v1676_v9 = vpop.eup %1675 }
 0x135   : > { %s1960_s10 = smov 8   ;;  %s2760_s16 = scalar_lea.vmem [#allocation10], %s2206_s0  ;;  %v1678_v0 = vpop.eup %1677 }
 0x136   : > { %1574 = dma.vmem_to_hbm [thread:$0]  (%p2891_p12), %s2712_s12, 256, %s2723_s28, %s2682_s18, %s1958_s26, %s1959_s19, %s1960_s10   ;;  %v896_v12 = vmul.f32 %v1676_v9, %v885_v45  ;;  %v897_v54 = vmul.f32 %v1678_v0, %v889_v7 }
 0x137   : > { %970 = vst.msk [vmem:[%s2760_s16] sm:$0x3] %vm2503_vm12, %v946_v46  ;;  %s1277_s0 = sshll.u32 %s2760_s16, 4  ;;  %s2775_s28 = scalar_lea.hbm %s2831_s4, %s1561_s17  ;;  %s2768_s0 = int_to_ptr.vmem [resolvable:$true] %s1277_s0 }
 0x138   : > { %1679 = vrsqrt.f32 %v896_v12  ;;  %vm914_vm0 = vcmp.eq.f32.partialorder %v896_v12, inf  ;;  %v917_v13 = vand.u32 2147483648, %v896_v12  ;;  %vm916_vm4 = vcmp.eq.f32.partialorder %v896_v12, 0.0  ;;  %s1254_s20 = scalar_lea.sflag [#allocation4], %s2203_s29  ;;  %s1859_s23 = scalar_lea.vmem %s2768_s0, 64 }
 0x139   : > { %1681 = vrsqrt.f32 %v897_v54  ;;  %vm921_vm5 = vcmp.eq.f32.partialorder %v897_v54, inf  ;;  %v924_v25 = vand.u32 2147483648, %v897_v54  ;;  %vm923_vm6 = vcmp.eq.f32.partialorder %v897_v54, 0.0  ;;  %p1860_p2 = scmp.ne.s32.totalorder %s2768_s0, %s1859_s23  ;;  %s1961_s30 = smov [#allocation10]  }
 0x13a   : > { %s1863_s1 = sshll.u32 %s1961_s30, 4  ;;  %s1864_s1 = int_to_ptr.vmem [resolvable:$false] %s1863_s1 }
 0x13b   : > { %p1861_p7 = pnand %p1860_p2, %p2891_p12  ;;  %s1865_s7 = scalar_lea.vmem %s1864_s1, 128 }
 0x13c   : > { %p1866_p6 = scmp.lt.s32.totalorder %s2768_s0, %s1864_s1  ;;  %p1867_p9 = scmp.lt.s32.totalorder %s1865_s7, %s1859_s23 }
 0x13d   : > { %p1862_p4 = pneg %p1861_p7 }
 0x13e   : > { %p1868_p1 = por %p1867_p9, %p1866_p6 }
 0x140   : > { %p1869_p5 = pnand %p1868_p1, %p1862_p4 }
 0x142   : > { %v1680_v15 = vpop.eup %1679 }
 0x143   : > { %v1682_v16 = vpop.eup %1681  ;;  %v913_v18 = vmul.f32 %v1680_v15, %v896_v12 }
 0x144   : > { %v920_v55 = vmul.f32 %v1682_v16, %v897_v54 }
 0x145   : > { %v915_v19 = vsel %vm914_vm0, %v896_v12, %v913_v18 }
 0x146   : > { %v918_v21 = vsel %vm916_vm4, %v917_v13, %v915_v19  ;;  %v922_v22 = vsel %vm921_vm5, %v897_v54, %v920_v55 }
 0x147   : > { %v925_v23 = vsel %vm923_vm6, %v924_v25, %v922_v22 }
 0x148   : > { %v947_v24 = vcombine.high %v918_v21, %v925_v23 }
 0x14a   : > { %v954_v27 = vrot.slane %v947_v24, %v2287_v38 }
 0x14c   : > { %v955_v28 = vcombine.high %v954_v27, %v954_v27 }
 0x14e   : > { %v962_v29 = vrot.slane %v955_v28, %v2287_v38 }
 0x150   : > { %v963_v30 = vcombine.high %v962_v29, %v962_v29 }
 0x152   : > { %971 = vst.msk [vmem:[%s2760_s16 + $0x2] sm:$0x3] %vm2503_vm12, %v963_v30 }
 0x153   : > { %1872 = shalt.err (!%p1869_p5)
}
 0x154   : > { %s1873_s25 = scalar_lea.hbm %s2775_s28, 64  ;;  %s1877_s13 = scalar_lea.hbm %s2831_s4, 128 }
 0x155   : > { %p1874_p10 = scmp.ne.s32.totalorder %s2775_s28, %s1873_s25  ;;  %p1878_p13 = scmp.lt.u32.totalorder %s2775_s28, %s2831_s4 }
 0x156   : > { %p1879_p11 = scmp.lt.u32.totalorder %s1877_s13, %s1873_s25  ;;  %p1881_p2 = scmp.lt.u32.totalorder %s1873_s25, %s2775_s28 }
 0x157   : > { %p1875_p3 = pnand %p1874_p10, %p2891_p12 }
 0x158   : > { %p1880_p0 = por %p1879_p11, %p1878_p13 }
 0x159   : > { %p1876_p8 = pneg %p1875_p3 }
 0x15a   : > { %p1882_p7 = por %p1881_p2, %p1880_p0 }
 0x15c   : > { %p1883_p4 = pnand %p1882_p7, %p1876_p8 }
 0x15e   : > { %1886 = shalt.err (!%p1883_p4)
}
 0x15f   : > { %1572 = dma.vmem_to_hbm [thread:$0]  (%p2891_p12), %s2768_s0, 64, %s2775_s28, %s1254_s20, %s1954_s2, %s1955_s11, %s1956_s14  }
 0x160 PF: > { %s1324_s10 = sand.u32 1, %s1925_s21   ;;  %p2892_p6 = scmp.ne.s32.totalorder %s2849_s9, 0 }
 0x161   : > { %p2893_p9 = scmp.ge.s32.totalorder %s1937_s24, 2  ;;  %s1325_s16 = scalar_lea.sflag [#allocation4], %s1324_s10 }
 0x163   : > { %p1592_p1 = pnand %p2893_p9, %p2892_p6 }
 0x165   : > { %1916 = dma.done.wait (!%p1592_p1), %s1325_s16, 64  }
 0x166   : > { %1918 = vsyncadd (!%p1592_p1), %s1325_s16, 4294967232  ;;  %s2894_s8 = sadd.s32 4294967294, %s1937_s24  }
 0x167   : > { %s1333_s12 = sand.u32 1, %s2894_s8  }
 0x168   : > { %s1334_s18 = scalar_lea.sflag [#allocation12], %s1333_s12 }
 0x169   : > { %1920 = dma.done.wait (!%p1592_p1), %s1334_s18, 320  }
 0x16a   : > { %1922 = vsyncadd (!%p1592_p1), %s1334_s18, 4294966976  ;;  %s2895_s29 = sld [smem:[#allocation19_spill]]  ;;  %s2896_s23 = sld [smem:[#allocation20_spill]] }
 0x16b   : > { %p29_p12 = scmp.ge.s32.totalorder %s2022_s27, 4   ;;  %s2897_s21 = smov %s1929_s22 }
 0x16c   : > { %s2899_s24 = smov %s2022_s27 }
 0x16d   :  { %31 = sbr.rel (!%p29_p12) target bundleno = 15 (0xf), region = 158 }
 0x170   : > { %s2898_s22 = smov %s2895_s29 }
 0x174   :  { %1348 = vsyncpa [#allocation3], 1 }
 0x175   :  { %1350 = vsyncpa [#allocation3 + $0x1], 1 }
 0x176   :  { %1351 = vsyncpa [#allocation6], 1 }
 0x177   :  { %1353 = vsyncpa [#allocation6 + $0x1], 1 }
 0x178   :  { %1354 = vsyncpa [#allocation9], 1 }
 0x179   :  { %1356 = vsyncpa [#allocation9 + $0x1], 1 }
 0x17a   :  { %1357 = vsyncpa [#allocation4], 1 }
 0x17b   :  { %1359 = vsyncpa [#allocation4 + $0x1], 1 }
 0x17c   :  { %1360 = vsyncpa [#allocation12], 1 }
 0x17d   :  { %1362 = vsyncpa [#allocation12 + $0x1], 1 }

</bundles_post_ra>
